<compile_context>
chip_gen: v5e
topology: v5e:2x2
jax: 0.10.0
libtpu: 0.0.40
codegen_flags: <defaults>
</compile_context>

<pallas_src>
import functools

import jax
import jax.numpy as jnp
from jax.experimental import pallas as pl
from jax.experimental.pallas import tpu as pltpu


def _round_up(x, m):
    return -(-x // m) * m


def _pick_batch_block(B, cap=8):
    """Largest divisor of B <= cap, keeping >= 2 grid steps whenever B >= 2."""
    best = 1
    for cand in range(1, min(B, cap) + 1):
        if B % cand != 0:
            continue
        if B >= 2 and B // cand < 2:
            continue
        best = cand
    return best


# -----------------------------------------------------------------------------
# Kernel.  One grid step processes BB batch images.
#
# Refs (per grid step):
#   x_ref   : (BB, Cin, H*W)          input, channel-major, flat pixels on lanes
#   h_ref   : (BB, Ch,  H*W)          previous hidden state
#   c_ref   : (BB, Ch,  H*W)          previous cell state
#   w_ref   : (4*Ch, K*K*Cc)          conv weight, tap/slot-major contraction
#   b_ref   : (4*Ch, 1)               conv bias (f32)
#   hout_ref, cout_ref : (BB, Ch, H*W)
# Scratch:
#   slab_ref  : (Cc, PADTOP + H*W + PADTOP)  zero-padded [x ; h] slab
#   stack_ref : (K*K*Cc, H*W)                im2col operand (deep contraction)
# -----------------------------------------------------------------------------
def _convlstm_kernel(x_ref, h_ref, c_ref, w_ref, b_ref, hout_ref, cout_ref,
                     slab_ref, stack_ref, *,
                     H, W, K, Cin, Ch, CpadIn, Cc, PADTOP, CHUNK, BB):
    HW = H * W
    p = K // 2
    n_chunks = HW // CHUNK

    # x-coordinate of every flattened pixel (hoisted; reused by all taps/images)
    col = jax.lax.broadcasted_iota(jnp.int32, (Cc, HW), 1) % W

    def per_image(b, carry):
        # ---- build zero-padded [x ; h_prev] slab (in-kernel concat + padding) -
        # Re-zeroed every image so the kernel stays correct when the batch grid
        # axis is split across TensorCores.
        slab_ref[...] = jnp.zeros(slab_ref.shape, slab_ref.dtype)
        slab_ref[0:Cin, PADTOP:PADTOP + HW] = x_ref[b]
        slab_ref[CpadIn:CpadIn + Ch, PADTOP:PADTOP + HW] = h_ref[b]

        # ---- im2col: fold the K*K taps into one (K*K*Cc, H*W) operand --------
        for dy in range(K):
            for dx in range(K):
                t = dy * K + dx
                start = PADTOP + (dy - p) * W + (dx - p)
                win = slab_ref[:, start:start + HW]
                dxs = dx - p
                if dxs != 0:
                    # zero pixels whose horizontal neighbour wrapped into the
                    # adjacent image row of the flattened pixel axis
                    keep = jnp.logical_and(col >= -dxs, col < W - dxs)
                    win = jnp.where(keep, win, jnp.zeros_like(win))
                stack_ref[t * Cc:(t + 1) * Cc, :] = win

        # ---- single deep-contraction matmul + gates, chunked over pixels -----
        def per_chunk(n, inner_carry):
            c0 = pl.multiple_of(n * CHUNK, CHUNK)
            patch = stack_ref[:, pl.ds(c0, CHUNK)]                # (K*K*Cc, CHUNK)
            acc = jnp.dot(w_ref[...], patch,
                          preferred_element_type=jnp.float32)     # (4*Ch, CHUNK)
            acc = acc + b_ref[...]                                 # bias per row

            ifo = jax.nn.sigmoid(acc[:3 * Ch])                     # full lane width
            g = jnp.tanh(acc[3 * Ch:])
            i_g = ifo[:Ch]
            f_g = ifo[Ch:2 * Ch]
            o_g = ifo[2 * Ch:]

            c_prev = c_ref[b, :, pl.ds(c0, CHUNK)].astype(jnp.float32)
            c_cur = f_g * c_prev + i_g * g
            h_cur = o_g * jnp.tanh(c_cur)

            hout_ref[b, :, pl.ds(c0, CHUNK)] = h_cur.astype(hout_ref.dtype)
            cout_ref[b, :, pl.ds(c0, CHUNK)] = c_cur.astype(cout_ref.dtype)
            return inner_carry

        jax.lax.fori_loop(0, n_chunks, per_chunk, 0, unroll=True)
        return carry

    jax.lax.fori_loop(0, BB, per_image, 0)


# -----------------------------------------------------------------------------
# Wrapper: NCHW in / NCHW out, matching the PyTorch module's forward().
# Only free reshapes + (tiny) weight re-layout happen outside the kernel.
# -----------------------------------------------------------------------------
def convlstm_cell_forward(x, h_prev, c_prev, weight_oihw, bias):
    """ConvLSTMCell.forward(x, [h_prev, c_prev]) -> (h_cur, c_cur), NCHW."""
    B, Cin, H, W = x.shape
    Ch = h_prev.shape[1]
    K = weight_oihw.shape[-1]
    assert K % 2 == 1, "padding = K//2 only matches 'same' conv for odd K"
    p = K // 2
    HW = H * W
    dtype = x.dtype

    CpadIn = _round_up(Cin, 8)                 # x slots padded to a sublane mult
    Cc = _round_up(CpadIn + Ch, 8)             # total per-tap channel slots
    PADTOP = 128                               # lane-aligned vertical pad region
    assert PADTOP >= p * W + p, "image too wide for fixed pad region"
    CHUNK = 128 if HW % 128 == 0 else HW       # pixel chunk per gate pass
    BB = _pick_batch_block(B)                  # images per grid step

    # free reshapes (metadata only): NCHW -> (B, C, H*W)
    x2 = x.reshape(B, Cin, HW)
    h2 = h_prev.reshape(B, Ch, HW)
    c2 = c_prev.reshape(B, Ch, HW)

    # weight OIHW -> (4*Ch, K*K*Cc); unused channel slots are zero columns.
    w_kkio = jnp.transpose(weight_oihw, (2, 3, 1, 0))          # (K,K,Cin+Ch,4Ch)
    w_slot = jnp.zeros((K, K, Cc, 4 * Ch), dtype)
    w_slot = w_slot.at[:, :, :Cin, :].set(w_kkio[:, :, :Cin, :].astype(dtype))
    w_slot = w_slot.at[:, :, CpadIn:CpadIn + Ch, :].set(
        w_kkio[:, :, Cin:, :].astype(dtype))
    w2d = w_slot.reshape(K * K * Cc, 4 * Ch).T                  # (4Ch, K*K*Cc)
    b2 = bias.reshape(4 * Ch, 1).astype(jnp.float32)

    kernel = functools.partial(
        _convlstm_kernel, H=H, W=W, K=K, Cin=Cin, Ch=Ch,
        CpadIn=CpadIn, Cc=Cc, PADTOP=PADTOP, CHUNK=CHUNK, BB=BB)

    h_out, c_out = pl.pallas_call(
        kernel,
        out_shape=(
            jax.ShapeDtypeStruct((B, Ch, HW), dtype),
            jax.ShapeDtypeStruct((B, Ch, HW), dtype),
        ),
        grid_spec=pltpu.PrefetchScalarGridSpec(
            num_scalar_prefetch=0,
            grid=(B // BB,),
            in_specs=[
                pl.BlockSpec((BB, Cin, HW), lambda i: (i, 0, 0)),
                pl.BlockSpec((BB, Ch, HW), lambda i: (i, 0, 0)),
                pl.BlockSpec((BB, Ch, HW), lambda i: (i, 0, 0)),
                pl.BlockSpec((4 * Ch, K * K * Cc), lambda i: (0, 0)),
                pl.BlockSpec((4 * Ch, 1), lambda i: (0, 0)),
            ],
            out_specs=[
                pl.BlockSpec((BB, Ch, HW), lambda i: (i, 0, 0)),
                pl.BlockSpec((BB, Ch, HW), lambda i: (i, 0, 0)),
            ],
            scratch_shapes=[
                pltpu.VMEM((Cc, PADTOP + HW + PADTOP), dtype),   # padded slab
                pltpu.VMEM((K * K * Cc, HW), dtype),             # im2col operand
            ],
        ),
        compiler_params=pltpu.CompilerParams(
            dimension_semantics=("parallel",)),
    )(x2, h2, c2, w2d, b2)

    # free reshapes back to NCHW (no transpose, no copy)
    return h_out.reshape(B, Ch, H, W), c_out.reshape(B, Ch, H, W)


# -----------------------------------------------------------------------------
# Pure-JAX reference (mirrors the PyTorch forward) for a correctness check.
# -----------------------------------------------------------------------------
def convlstm_cell_reference(x, h_prev, c_prev, weight_oihw, bias):
    combined = jnp.concatenate([x, h_prev], axis=1)                # NCHW
    conv = jax.lax.conv_general_dilated(
        combined, weight_oihw, window_strides=(1, 1),
        padding="SAME",
        dimension_numbers=("NCHW", "OIHW", "NCHW"))
    conv = conv + bias[None, :, None, None]
    Ch = h_prev.shape[1]
    cc_i, cc_f, cc_o, cc_g = (conv[:, k * Ch:(k + 1) * Ch] for k in range(4))
    i = jax.nn.sigmoid(cc_i)
    f = jax.nn.sigmoid(cc_f)
    o = jax.nn.sigmoid(cc_o)
    g = jnp.tanh(cc_g)
    c_cur = f * c_prev + i * g
    h_cur = o * jnp.tanh(c_cur)
    return h_cur, c_cur


if __name__ == "__main__":
    # Module hyperparameters (small, consistent with the PyTorch module)
    B, Cin, Ch, H, W, K = 2, 4, 32, 16, 16, 3

    key = jax.random.PRNGKey(0)
    kx, kh, kc, kw = jax.random.split(key, 4)

    x = jax.random.normal(kx, (B, Cin, H, W), jnp.float32)
    h_prev = jax.random.normal(kh, (B, Ch, H, W), jnp.float32)
    c_prev = jax.random.normal(kc, (B, Ch, H, W), jnp.float32)

    # Deterministic Xavier-uniform init with gain for tanh (5/3), like
    # nn.init.xavier_uniform_(conv.weight, gain=calculate_gain('tanh')).
    fan_in = (Cin + Ch) * K * K
    fan_out = 4 * Ch * K * K
    gain = 5.0 / 3.0
    bound = gain * jnp.sqrt(6.0 / (fan_in + fan_out))
    weight = jax.random.uniform(
        kw, (4 * Ch, Cin + Ch, K, K), jnp.float32, minval=-bound, maxval=bound)
    bias = jnp.zeros((4 * Ch,), jnp.float32)   # conv.bias.data.zero_()

    h_cur, c_cur = jax.jit(convlstm_cell_forward)(x, h_prev, c_prev, weight, bias)
    jax.block_until_ready((h_cur, c_cur))

    h_ref, c_ref = convlstm_cell_reference(x, h_prev, c_prev, weight, bias)
    assert h_cur.shape == (B, Ch, H, W) and c_cur.shape == (B, Ch, H, W)
    assert jnp.allclose(h_cur, h_ref, atol=1e-3, rtol=1e-3)
    assert jnp.allclose(c_cur, c_ref, atol=1e-3, rtol=1e-3)

    print("KERNEL_OK")
</pallas_src>

<mosaic_0001>
module attributes {stable_mosaic.version = 11 : i64} {
  func.func @_convlstm_kernel(%arg0: i32, %arg1: memref<1x4x256xf32, #tpu.memory_space<vmem>>, %arg2: memref<1x32x256xf32, #tpu.memory_space<vmem>>, %arg3: memref<1x32x256xf32, #tpu.memory_space<vmem>>, %arg4: memref<128x360xf32, #tpu.memory_space<vmem>>, %arg5: memref<128x1xf32, #tpu.memory_space<vmem>>, %arg6: memref<1x32x256xf32, #tpu.memory_space<vmem>>, %arg7: memref<1x32x256xf32, #tpu.memory_space<vmem>>, %arg8: memref<40x512xf32, #tpu.memory_space<vmem>>, %arg9: memref<360x256xf32, #tpu.memory_space<vmem>>) attributes {dimension_semantics = [#tpu.dimension_semantics<parallel>], iteration_bounds = array<i64: 2>, scalar_prefetch = 0 : i64, scratch_operands = 2 : i64, tpu.core_type = #tpu.core_type<tc>, window_params = [{transform_indices = @transform_0, window_bounds = array<i64: 1, 4, 256>}, {transform_indices = @transform_1, window_bounds = array<i64: 1, 32, 256>}, {transform_indices = @transform_2, window_bounds = array<i64: 1, 32, 256>}, {pipeline_mode = #tpu.pipeline_mode<synchronous>, transform_indices = @transform_3, window_bounds = array<i64: 128, 360>}, {pipeline_mode = #tpu.pipeline_mode<synchronous>, transform_indices = @transform_4, window_bounds = array<i64: 128, 1>}, {transform_indices = @transform_5, window_bounds = array<i64: 1, 32, 256>}, {transform_indices = @transform_6, window_bounds = array<i64: 1, 32, 256>}]} {
    %0 = tpu.iota {dimensions = array<i32: 1>} : vector<40x256xi32>
    %c16_i32 = arith.constant 16 : i32
    %c0_i32 = arith.constant 0 : i32
    %1 = arith.cmpi eq, %c16_i32, %c0_i32 : i32
    %c1_i32 = arith.constant 1 : i32
    %2 = arith.select %1, %c1_i32, %c16_i32 : i32
    %3 = vector.broadcast %2 : i32 to vector<40x256xi32>
    %4 = arith.remsi %0, %3 : vector<40x256xi32>
    %c0_i32_0 = arith.constant 0 : i32
    %5 = vector.broadcast %c0_i32_0 : i32 to vector<40x256xi32>
    %6 = arith.cmpi ne, %4, %5 : vector<40x256xi32>
    %c0_i32_1 = arith.constant 0 : i32
    %7 = vector.broadcast %c0_i32_1 : i32 to vector<40x256xi32>
    %8 = arith.cmpi slt, %4, %7 : vector<40x256xi32>
    %c0_i32_2 = arith.constant 0 : i32
    %9 = arith.cmpi slt, %2, %c0_i32_2 : i32
    %10 = vector.broadcast %9 : i1 to vector<40x256xi1>
    %11 = vector.broadcast %10 : vector<40x256xi1> to vector<40x256xi1>
    %12 = arith.xori %8, %11 : vector<40x256xi1>
    %13 = arith.andi %12, %6 : vector<40x256xi1>
    %14 = vector.broadcast %2 : i32 to vector<40x256xi32>
    %15 = arith.addi %4, %14 : vector<40x256xi32>
    %16 = arith.select %13, %15, %4 : vector<40x256xi1>, vector<40x256xi32>
    %c0_i32_3 = arith.constant 0 : i32
    %cst = arith.constant 0.000000e+00 : f32
    %17 = vector.broadcast %cst : f32 to vector<40x512xf32>
    %c0 = arith.constant 0 : index
    %c0_4 = arith.constant 0 : index
    %18 = vector.load %arg8[%c0, %c0_4] : memref<40x512xf32, #tpu.memory_space<vmem>>, vector<40x512xf32>
    tpu.vector_store %arg8[%c0, %c0_4], %17 {strides = array<i32>} : memref<40x512xf32, #tpu.memory_space<vmem>>, vector<40x512xf32>,
    %19 = arith.index_cast %c0_i32_3 : i32 to index
    %c0_5 = arith.constant 0 : index
    %c0_6 = arith.constant 0 : index
    %20 = vector.load %arg1[%19, %c0_5, %c0_6] : memref<1x4x256xf32, #tpu.memory_space<vmem>>, vector<1x4x256xf32>
    %21 = vector.shape_cast %20 : vector<1x4x256xf32> to vector<4x256xf32>
    %c0_7 = arith.constant 0 : index
    %c128 = arith.constant 128 : index
    %22 = vector.load %arg8[%c0_7, %c128] : memref<40x512xf32, #tpu.memory_space<vmem>>, vector<4x256xf32>
    tpu.vector_store %arg8[%c0_7, %c128], %21 {strides = array<i32>} : memref<40x512xf32, #tpu.memory_space<vmem>>, vector<4x256xf32>,
    %23 = arith.index_cast %c0_i32_3 : i32 to index
    %c0_8 = arith.constant 0 : index
    %c0_9 = arith.constant 0 : index
    %24 = vector.load %arg2[%23, %c0_8, %c0_9] : memref<1x32x256xf32, #tpu.memory_space<vmem>>, vector<1x32x256xf32>
    %25 = vector.shape_cast %24 : vector<1x32x256xf32> to vector<32x256xf32>
    %c8 = arith.constant 8 : index
    %c128_10 = arith.constant 128 : index
    %26 = vector.load %arg8[%c8, %c128_10] : memref<40x512xf32, #tpu.memory_space<vmem>>, vector<32x256xf32>
    tpu.vector_store %arg8[%c8, %c128_10], %25 {strides = array<i32>} : memref<40x512xf32, #tpu.memory_space<vmem>>, vector<32x256xf32>,
    %c0_11 = arith.constant 0 : index
    %c111 = arith.constant 111 : index
    %27 = vector.load %arg8[%c0_11, %c111] : memref<40x512xf32, #tpu.memory_space<vmem>>, vector<40x256xf32>
    %c1_i32_12 = arith.constant 1 : i32
    %28 = vector.broadcast %c1_i32_12 : i32 to vector<40x256xi32>
    %29 = arith.cmpi sge, %16, %28 : vector<40x256xi32>
    %c17_i32 = arith.constant 17 : i32
    %30 = vector.broadcast %c17_i32 : i32 to vector<40x256xi32>
    %31 = arith.cmpi slt, %16, %30 : vector<40x256xi32>
    %32 = arith.andi %29, %31 : vector<40x256xi1>
    %cst_13 = arith.constant 0.000000e+00 : f32
    %33 = vector.broadcast %cst_13 : f32 to vector<40x256xf32>
    %34 = arith.select %32, %27, %33 : vector<40x256xi1>, vector<40x256xf32>
    %c0_14 = arith.constant 0 : index
    %c0_15 = arith.constant 0 : index
    %35 = vector.load %arg9[%c0_14, %c0_15] : memref<360x256xf32, #tpu.memory_space<vmem>>, vector<40x256xf32>
    tpu.vector_store %arg9[%c0_14, %c0_15], %34 {strides = array<i32>} : memref<360x256xf32, #tpu.memory_space<vmem>>, vector<40x256xf32>,
    %c0_16 = arith.constant 0 : index
    %c112 = arith.constant 112 : index
    %36 = vector.load %arg8[%c0_16, %c112] : memref<40x512xf32, #tpu.memory_space<vmem>>, vector<40x256xf32>
    %c40 = arith.constant 40 : index
    %c0_17 = arith.constant 0 : index
    %37 = vector.load %arg9[%c40, %c0_17] : memref<360x256xf32, #tpu.memory_space<vmem>>, vector<40x256xf32>
    tpu.vector_store %arg9[%c40, %c0_17], %36 {strides = array<i32>} : memref<360x256xf32, #tpu.memory_space<vmem>>, vector<40x256xf32>,
    %c0_18 = arith.constant 0 : index
    %c113 = arith.constant 113 : index
    %38 = vector.load %arg8[%c0_18, %c113] : memref<40x512xf32, #tpu.memory_space<vmem>>, vector<40x256xf32>
    %c-1_i32 = arith.constant -1 : i32
    %39 = vector.broadcast %c-1_i32 : i32 to vector<40x256xi32>
    %40 = arith.cmpi sge, %16, %39 : vector<40x256xi32>
    %c15_i32 = arith.constant 15 : i32
    %41 = vector.broadcast %c15_i32 : i32 to vector<40x256xi32>
    %42 = arith.cmpi slt, %16, %41 : vector<40x256xi32>
    %43 = arith.andi %40, %42 : vector<40x256xi1>
    %cst_19 = arith.constant 0.000000e+00 : f32
    %44 = vector.broadcast %cst_19 : f32 to vector<40x256xf32>
    %45 = arith.select %43, %38, %44 : vector<40x256xi1>, vector<40x256xf32>
    %c80 = arith.constant 80 : index
    %c0_20 = arith.constant 0 : index
    %46 = vector.load %arg9[%c80, %c0_20] : memref<360x256xf32, #tpu.memory_space<vmem>>, vector<40x256xf32>
    tpu.vector_store %arg9[%c80, %c0_20], %45 {strides = array<i32>} : memref<360x256xf32, #tpu.memory_space<vmem>>, vector<40x256xf32>,
    %c0_21 = arith.constant 0 : index
    %c127 = arith.constant 127 : index
    %47 = vector.load %arg8[%c0_21, %c127] : memref<40x512xf32, #tpu.memory_space<vmem>>, vector<40x256xf32>
    %c1_i32_22 = arith.constant 1 : i32
    %48 = vector.broadcast %c1_i32_22 : i32 to vector<40x256xi32>
    %49 = arith.cmpi sge, %16, %48 : vector<40x256xi32>
    %c17_i32_23 = arith.constant 17 : i32
    %50 = vector.broadcast %c17_i32_23 : i32 to vector<40x256xi32>
    %51 = arith.cmpi slt, %16, %50 : vector<40x256xi32>
    %52 = arith.andi %49, %51 : vector<40x256xi1>
    %cst_24 = arith.constant 0.000000e+00 : f32
    %53 = vector.broadcast %cst_24 : f32 to vector<40x256xf32>
    %54 = arith.select %52, %47, %53 : vector<40x256xi1>, vector<40x256xf32>
    %c120 = arith.constant 120 : index
    %c0_25 = arith.constant 0 : index
    %55 = vector.load %arg9[%c120, %c0_25] : memref<360x256xf32, #tpu.memory_space<vmem>>, vector<40x256xf32>
    tpu.vector_store %arg9[%c120, %c0_25], %54 {strides = array<i32>} : memref<360x256xf32, #tpu.memory_space<vmem>>, vector<40x256xf32>,
    %c0_26 = arith.constant 0 : index
    %c128_27 = arith.constant 128 : index
    %56 = vector.load %arg8[%c0_26, %c128_27] : memref<40x512xf32, #tpu.memory_space<vmem>>, vector<40x256xf32>
    %c160 = arith.constant 160 : index
    %c0_28 = arith.constant 0 : index
    %57 = vector.load %arg9[%c160, %c0_28] : memref<360x256xf32, #tpu.memory_space<vmem>>, vector<40x256xf32>
    tpu.vector_store %arg9[%c160, %c0_28], %56 {strides = array<i32>} : memref<360x256xf32, #tpu.memory_space<vmem>>, vector<40x256xf32>,
    %c0_29 = arith.constant 0 : index
    %c129 = arith.constant 129 : index
    %58 = vector.load %arg8[%c0_29, %c129] : memref<40x512xf32, #tpu.memory_space<vmem>>, vector<40x256xf32>
    %c-1_i32_30 = arith.constant -1 : i32
    %59 = vector.broadcast %c-1_i32_30 : i32 to vector<40x256xi32>
    %60 = arith.cmpi sge, %16, %59 : vector<40x256xi32>
    %c15_i32_31 = arith.constant 15 : i32
    %61 = vector.broadcast %c15_i32_31 : i32 to vector<40x256xi32>
    %62 = arith.cmpi slt, %16, %61 : vector<40x256xi32>
    %63 = arith.andi %60, %62 : vector<40x256xi1>
    %cst_32 = arith.constant 0.000000e+00 : f32
    %64 = vector.broadcast %cst_32 : f32 to vector<40x256xf32>
    %65 = arith.select %63, %58, %64 : vector<40x256xi1>, vector<40x256xf32>
    %c200 = arith.constant 200 : index
    %c0_33 = arith.constant 0 : index
    %66 = vector.load %arg9[%c200, %c0_33] : memref<360x256xf32, #tpu.memory_space<vmem>>, vector<40x256xf32>
    tpu.vector_store %arg9[%c200, %c0_33], %65 {strides = array<i32>} : memref<360x256xf32, #tpu.memory_space<vmem>>, vector<40x256xf32>,
    %c0_34 = arith.constant 0 : index
    %c143 = arith.constant 143 : index
    %67 = vector.load %arg8[%c0_34, %c143] : memref<40x512xf32, #tpu.memory_space<vmem>>, vector<40x256xf32>
    %c1_i32_35 = arith.constant 1 : i32
    %68 = vector.broadcast %c1_i32_35 : i32 to vector<40x256xi32>
    %69 = arith.cmpi sge, %16, %68 : vector<40x256xi32>
    %c17_i32_36 = arith.constant 17 : i32
    %70 = vector.broadcast %c17_i32_36 : i32 to vector<40x256xi32>
    %71 = arith.cmpi slt, %16, %70 : vector<40x256xi32>
    %72 = arith.andi %69, %71 : vector<40x256xi1>
    %cst_37 = arith.constant 0.000000e+00 : f32
    %73 = vector.broadcast %cst_37 : f32 to vector<40x256xf32>
    %74 = arith.select %72, %67, %73 : vector<40x256xi1>, vector<40x256xf32>
    %c240 = arith.constant 240 : index
    %c0_38 = arith.constant 0 : index
    %75 = vector.load %arg9[%c240, %c0_38] : memref<360x256xf32, #tpu.memory_space<vmem>>, vector<40x256xf32>
    tpu.vector_store %arg9[%c240, %c0_38], %74 {strides = array<i32>} : memref<360x256xf32, #tpu.memory_space<vmem>>, vector<40x256xf32>,
    %c0_39 = arith.constant 0 : index
    %c144 = arith.constant 144 : index
    %76 = vector.load %arg8[%c0_39, %c144] : memref<40x512xf32, #tpu.memory_space<vmem>>, vector<40x256xf32>
    %c280 = arith.constant 280 : index
    %c0_40 = arith.constant 0 : index
    %77 = vector.load %arg9[%c280, %c0_40] : memref<360x256xf32, #tpu.memory_space<vmem>>, vector<40x256xf32>
    tpu.vector_store %arg9[%c280, %c0_40], %76 {strides = array<i32>} : memref<360x256xf32, #tpu.memory_space<vmem>>, vector<40x256xf32>,
    %c0_41 = arith.constant 0 : index
    %c145 = arith.constant 145 : index
    %78 = vector.load %arg8[%c0_41, %c145] : memref<40x512xf32, #tpu.memory_space<vmem>>, vector<40x256xf32>
    %c-1_i32_42 = arith.constant -1 : i32
    %79 = vector.broadcast %c-1_i32_42 : i32 to vector<40x256xi32>
    %80 = arith.cmpi sge, %16, %79 : vector<40x256xi32>
    %c15_i32_43 = arith.constant 15 : i32
    %81 = vector.broadcast %c15_i32_43 : i32 to vector<40x256xi32>
    %82 = arith.cmpi slt, %16, %81 : vector<40x256xi32>
    %83 = arith.andi %80, %82 : vector<40x256xi1>
    %cst_44 = arith.constant 0.000000e+00 : f32
    %84 = vector.broadcast %cst_44 : f32 to vector<40x256xf32>
    %85 = arith.select %83, %78, %84 : vector<40x256xi1>, vector<40x256xf32>
    %c320 = arith.constant 320 : index
    %c0_45 = arith.constant 0 : index
    %86 = vector.load %arg9[%c320, %c0_45] : memref<360x256xf32, #tpu.memory_space<vmem>>, vector<40x256xf32>
    tpu.vector_store %arg9[%c320, %c0_45], %85 {strides = array<i32>} : memref<360x256xf32, #tpu.memory_space<vmem>>, vector<40x256xf32>,
    %c0_i32_46 = arith.constant 0 : i32
    %c128_i32 = arith.constant 128 : i32
    %87 = arith.muli %c0_i32_46, %c128_i32 : i32
    %88 = tpu.assume_multiple %87, 128 : i32
    %c0_47 = arith.constant 0 : index
    %89 = arith.index_cast %88 : i32 to index
    %90 = vector.load %arg9[%c0_47, %89] : memref<360x256xf32, #tpu.memory_space<vmem>>, vector<360x128xf32>
    %c0_48 = arith.constant 0 : index
    %c0_49 = arith.constant 0 : index
    %91 = vector.load %arg4[%c0_48, %c0_49] : memref<128x360xf32, #tpu.memory_space<vmem>>, vector<128x360xf32>
    %cst_50 = arith.constant dense<0.000000e+00> : vector<128x128xf32>
    %92 = tpu.matmul %91, %90, %cst_50 {dimension_numbers = #tpu.dot_dimension_numbers<[1], [0], [0], [1], [0, 0, 1, 1], [], []>} : vector<128x360xf32>, vector<360x128xf32>, vector<128x128xf32> -> vector<128x128xf32>
    %c0_51 = arith.constant 0 : index
    %c0_52 = arith.constant 0 : index
    %93 = vector.load %arg5[%c0_51, %c0_52] : memref<128x1xf32, #tpu.memory_space<vmem>>, vector<128x1xf32>
    %94 = vector.broadcast %93 : vector<128x1xf32> to vector<128x128xf32>
    %95 = arith.addf %92, %94 : vector<128x128xf32>
    %96 = vector.extract_strided_slice %95 {offsets = [0, 0], sizes = [96, 128], strides = [1, 1]} : vector<128x128xf32> to vector<96x128xf32>
    %97 = arith.negf %96 : vector<96x128xf32>
    %98 = math.exp %97 : vector<96x128xf32>
    %cst_53 = arith.constant 1.000000e+00 : f32
    %99 = vector.broadcast %cst_53 : f32 to vector<96x128xf32>
    %100 = arith.addf %99, %98 : vector<96x128xf32>
    %101 = arith.divf %99, %100 : vector<96x128xf32>
    %102 = vector.extract_strided_slice %95 {offsets = [96, 0], sizes = [32, 128], strides = [1, 1]} : vector<128x128xf32> to vector<32x128xf32>
    %103 = math.tanh %102 : vector<32x128xf32>
    %104 = vector.extract_strided_slice %101 {offsets = [0, 0], sizes = [32, 128], strides = [1, 1]} : vector<96x128xf32> to vector<32x128xf32>
    %105 = vector.extract_strided_slice %101 {offsets = [32, 0], sizes = [32, 128], strides = [1, 1]} : vector<96x128xf32> to vector<32x128xf32>
    %106 = vector.extract_strided_slice %101 {offsets = [64, 0], sizes = [32, 128], strides = [1, 1]} : vector<96x128xf32> to vector<32x128xf32>
    %107 = arith.index_cast %c0_i32_3 : i32 to index
    %c0_54 = arith.constant 0 : index
    %108 = arith.index_cast %88 : i32 to index
    %109 = vector.load %arg3[%107, %c0_54, %108] : memref<1x32x256xf32, #tpu.memory_space<vmem>>, vector<1x32x128xf32>
    %110 = vector.shape_cast %109 : vector<1x32x128xf32> to vector<32x128xf32>
    %111 = arith.mulf %105, %110 : vector<32x128xf32>
    %112 = arith.mulf %104, %103 : vector<32x128xf32>
    %113 = arith.addf %111, %112 : vector<32x128xf32>
    %114 = math.tanh %113 : vector<32x128xf32>
    %115 = arith.mulf %106, %114 : vector<32x128xf32>
    %116 = arith.index_cast %c0_i32_3 : i32 to index
    %c0_55 = arith.constant 0 : index
    %117 = arith.index_cast %88 : i32 to index
    %118 = vector.load %arg6[%116, %c0_55, %117] : memref<1x32x256xf32, #tpu.memory_space<vmem>>, vector<1x32x128xf32>
    %119 = vector.shape_cast %118 : vector<1x32x128xf32> to vector<32x128xf32>
    %120 = vector.shape_cast %115 : vector<32x128xf32> to vector<1x32x128xf32>
    tpu.vector_store %arg6[%116, %c0_55, %117], %120 {strides = array<i32>} : memref<1x32x256xf32, #tpu.memory_space<vmem>>, vector<1x32x128xf32>,
    %121 = arith.index_cast %c0_i32_3 : i32 to index
    %c0_56 = arith.constant 0 : index
    %122 = arith.index_cast %88 : i32 to index
    %123 = vector.load %arg7[%121, %c0_56, %122] : memref<1x32x256xf32, #tpu.memory_space<vmem>>, vector<1x32x128xf32>
    %124 = vector.shape_cast %123 : vector<1x32x128xf32> to vector<32x128xf32>
    %125 = vector.shape_cast %113 : vector<32x128xf32> to vector<1x32x128xf32>
    tpu.vector_store %arg7[%121, %c0_56, %122], %125 {strides = array<i32>} : memref<1x32x256xf32, #tpu.memory_space<vmem>>, vector<1x32x128xf32>,
    %c1_i32_57 = arith.constant 1 : i32
    %c128_i32_58 = arith.constant 128 : i32
    %126 = arith.muli %c1_i32_57, %c128_i32_58 : i32
    %127 = tpu.assume_multiple %126, 128 : i32
    %c0_59 = arith.constant 0 : index
    %128 = arith.index_cast %127 : i32 to index
    %129 = vector.load %arg9[%c0_59, %128] : memref<360x256xf32, #tpu.memory_space<vmem>>, vector<360x128xf32>
    %c0_60 = arith.constant 0 : index
    %c0_61 = arith.constant 0 : index
    %130 = vector.load %arg4[%c0_60, %c0_61] : memref<128x360xf32, #tpu.memory_space<vmem>>, vector<128x360xf32>
    %cst_62 = arith.constant dense<0.000000e+00> : vector<128x128xf32>
    %131 = tpu.matmul %130, %129, %cst_62 {dimension_numbers = #tpu.dot_dimension_numbers<[1], [0], [0], [1], [0, 0, 1, 1], [], []>} : vector<128x360xf32>, vector<360x128xf32>, vector<128x128xf32> -> vector<128x128xf32>
    %c0_63 = arith.constant 0 : index
    %c0_64 = arith.constant 0 : index
    %132 = vector.load %arg5[%c0_63, %c0_64] : memref<128x1xf32, #tpu.memory_space<vmem>>, vector<128x1xf32>
    %133 = vector.broadcast %132 : vector<128x1xf32> to vector<128x128xf32>
    %134 = arith.addf %131, %133 : vector<128x128xf32>
    %135 = vector.extract_strided_slice %134 {offsets = [0, 0], sizes = [96, 128], strides = [1, 1]} : vector<128x128xf32> to vector<96x128xf32>
    %136 = arith.negf %135 : vector<96x128xf32>
    %137 = math.exp %136 : vector<96x128xf32>
    %cst_65 = arith.constant 1.000000e+00 : f32
    %138 = vector.broadcast %cst_65 : f32 to vector<96x128xf32>
    %139 = arith.addf %138, %137 : vector<96x128xf32>
    %140 = arith.divf %138, %139 : vector<96x128xf32>
    %141 = vector.extract_strided_slice %134 {offsets = [96, 0], sizes = [32, 128], strides = [1, 1]} : vector<128x128xf32> to vector<32x128xf32>
    %142 = math.tanh %141 : vector<32x128xf32>
    %143 = vector.extract_strided_slice %140 {offsets = [0, 0], sizes = [32, 128], strides = [1, 1]} : vector<96x128xf32> to vector<32x128xf32>
    %144 = vector.extract_strided_slice %140 {offsets = [32, 0], sizes = [32, 128], strides = [1, 1]} : vector<96x128xf32> to vector<32x128xf32>
    %145 = vector.extract_strided_slice %140 {offsets = [64, 0], sizes = [32, 128], strides = [1, 1]} : vector<96x128xf32> to vector<32x128xf32>
    %146 = arith.index_cast %c0_i32_3 : i32 to index
    %c0_66 = arith.constant 0 : index
    %147 = arith.index_cast %127 : i32 to index
    %148 = vector.load %arg3[%146, %c0_66, %147] : memref<1x32x256xf32, #tpu.memory_space<vmem>>, vector<1x32x128xf32>
    %149 = vector.shape_cast %148 : vector<1x32x128xf32> to vector<32x128xf32>
    %150 = arith.mulf %144, %149 : vector<32x128xf32>
    %151 = arith.mulf %143, %142 : vector<32x128xf32>
    %152 = arith.addf %150, %151 : vector<32x128xf32>
    %153 = math.tanh %152 : vector<32x128xf32>
    %154 = arith.mulf %145, %153 : vector<32x128xf32>
    %155 = arith.index_cast %c0_i32_3 : i32 to index
    %c0_67 = arith.constant 0 : index
    %156 = arith.index_cast %127 : i32 to index
    %157 = vector.load %arg6[%155, %c0_67, %156] : memref<1x32x256xf32, #tpu.memory_space<vmem>>, vector<1x32x128xf32>
    %158 = vector.shape_cast %157 : vector<1x32x128xf32> to vector<32x128xf32>
    %159 = vector.shape_cast %154 : vector<32x128xf32> to vector<1x32x128xf32>
    tpu.vector_store %arg6[%155, %c0_67, %156], %159 {strides = array<i32>} : memref<1x32x256xf32, #tpu.memory_space<vmem>>, vector<1x32x128xf32>,
    %160 = arith.index_cast %c0_i32_3 : i32 to index
    %c0_68 = arith.constant 0 : index
    %161 = arith.index_cast %127 : i32 to index
    %162 = vector.load %arg7[%160, %c0_68, %161] : memref<1x32x256xf32, #tpu.memory_space<vmem>>, vector<1x32x128xf32>
    %163 = vector.shape_cast %162 : vector<1x32x128xf32> to vector<32x128xf32>
    %164 = vector.shape_cast %152 : vector<32x128xf32> to vector<1x32x128xf32>
    tpu.vector_store %arg7[%160, %c0_68, %161], %164 {strides = array<i32>} : memref<1x32x256xf32, #tpu.memory_space<vmem>>, vector<1x32x128xf32>,
    %c2_i32 = arith.constant 2 : i32
    %c1_i32_69 = arith.constant 1 : i32
    return
  }
  func.func @transform_0(%arg0: i32) -> (i32, i32, i32) {
    %c0_i32 = arith.constant 0 : i32
    %c0_i32_0 = arith.constant 0 : i32
    %c0_i32_1 = arith.constant 0 : i32
    return %arg0, %c0_i32, %c0_i32_0 : i32, i32, i32
  }
  func.func @transform_1(%arg0: i32) -> (i32, i32, i32) {
    %c0_i32 = arith.constant 0 : i32
    %c0_i32_0 = arith.constant 0 : i32
    %c0_i32_1 = arith.constant 0 : i32
    return %arg0, %c0_i32, %c0_i32_0 : i32, i32, i32
  }
  func.func @transform_2(%arg0: i32) -> (i32, i32, i32) {
    %c0_i32 = arith.constant 0 : i32
    %c0_i32_0 = arith.constant 0 : i32
    %c0_i32_1 = arith.constant 0 : i32
    return %arg0, %c0_i32, %c0_i32_0 : i32, i32, i32
  }
  func.func @transform_3(%arg0: i32) -> (i32, i32) {
    %c0_i32 = arith.constant 0 : i32
    %c0_i32_0 = arith.constant 0 : i32
    %c0_i32_1 = arith.constant 0 : i32
    return %c0_i32, %c0_i32_0 : i32, i32
  }
  func.func @transform_4(%arg0: i32) -> (i32, i32) {
    %c0_i32 = arith.constant 0 : i32
    %c0_i32_0 = arith.constant 0 : i32
    %c0_i32_1 = arith.constant 0 : i32
    return %c0_i32, %c0_i32_0 : i32, i32
  }
  func.func @transform_5(%arg0: i32) -> (i32, i32, i32) {
    %c0_i32 = arith.constant 0 : i32
    %c0_i32_0 = arith.constant 0 : i32
    %c0_i32_1 = arith.constant 0 : i32
    return %arg0, %c0_i32, %c0_i32_0 : i32, i32, i32
  }
  func.func @transform_6(%arg0: i32) -> (i32, i32, i32) {
    %c0_i32 = arith.constant 0 : i32
    %c0_i32_0 = arith.constant 0 : i32
    %c0_i32_1 = arith.constant 0 : i32
    return %arg0, %c0_i32, %c0_i32_0 : i32, i32, i32
  }
}

</mosaic_0001>

<bundles_post_ra>
// kernel: convlstm_cell_forward.1
= control target key start
LH: loop header
LB: loop body
LE: loop exit
PB: predicated region body
PF: predicated region fallthrough
CT: control target
= control target key end

     0   :  { %s3217_s21 = smov 0   ;;  %s5435_s0 = inlined_call_operand.vmem [shape: f32[2,4,256], index: 0, kind: input, shape index: {}]   ;;  %s5436_s1 = inlined_call_operand.vmem [shape: f32[2,32,256], index: 1, kind: input, shape index: {}]   ;;  %s5437_s2 = inlined_call_operand.vmem [shape: f32[2,32,256], index: 2, kind: input, shape index: {}]   ;;  %s5438_s3 = inlined_call_operand.vmem [shape: f32[128,360], index: 3, kind: input, shape index: {}]   ;;  %s5439_s4 = inlined_call_operand.vmem [shape: f32[128,1], index: 4, kind: input, shape index: {}]   ;;  %s5440_s5 = inlined_call_operand.vmem [shape: f32[2,32,256], index: 5, kind: output, shape index: {0}]   ;;  %s5441_s6 = inlined_call_operand.vmem [shape: f32[2,32,256], index: 6, kind: output, shape index: {1}]  }
   0x1 LB: > { %s2706_s22 = sadd.s32 4294967295, %s3170_s21   ;;  %p2710_p0 = scmp.ge.s32.totalorder %s3170_s21, 1  ;;  %s3170_s21 = sphi %s3217_s21, %s17_s21  }
   0x2   : > { %p235_p1 = scmp.lt.s32.totalorder %s3170_s21, 3 }
   0x4   : > { %p236_p2 = pnand %p2710_p0, %p235_p1 }
   0x6   : > { %239 = sbr.rel (%p236_p2) target bundleno = 663 (0x297), region = 40 }
   0xb   : > { %p280_p3 = scmp.lt.s32.totalorder %s2706_s22, 1  ;;  %v3172_v0 = vmov 0.0   ;;  %s3173_s23 = smov 17   ;;  %vm443_vm0 = vcmask 138240   ;;  %vm544_vm1 = vcmask 130048   ;;  %vm641_vm2 = vcmask 121856  }
   0xc   : > { %2909 = vrot.lane.b32.xlu2 %v3172_v0, %s3173_s23  ;;  %2904 = vrot.lane.b32.xlu0 %v3172_v0, %s3173_s23  ;;  %333 = vst [vmem:[#allocation2 + $0x38] sm:$0xff] %v3172_v0  ;;  %s3174_s8 = smov 16   ;;  %s3175_s9 = smov 15   ;;  %vm742_vm3 = vcmask 7168   ;;  %vm1156_vm6 = vcmask 908288   ;;  %vm1065_vm7 = vcmask 916480  }
   0xd   : > { %s5597_s22 = smov (!%p280_p3, %s2706_s22), 1  ;;  %334 = vst [vmem:[#allocation2 + $0x50] sm:$0xff] %v3172_v0  ;;  %s3176_s10 = smov 1   ;;  %vm964_vm8 = vcmask 924672   ;;  %vm1386_vm9 = vcmask 850944   ;;  %vm863_vm12 = vcmask 1039360  }
   0xe   : > { %s3230_s24 = sshll.u32 %s5597_s22, 6  ;;  %s2791_s28 = sshll.u32 %s5597_s22, 3 }
   0xf   : > { %s289_s27 = scalar_lea.vmem %s5436_s1, %s3230_s24  ;;  %s284_s7 = scalar_lea.vmem %s5435_s0, %s2791_s28 }
  0x10   : > { %v3237_v1 = vld [vmem:[%s289_s27] sm:$0xff]  ;;  %v3244_v2 = vld [vmem:[%s289_s27 + $0x10] sm:$0xff]  ;;  %v3246_v3 = vld [vmem:[%s289_s27 + $0x8] sm:$0xff]  ;;  %s3177_s11 = smov 111   ;;  %s3178_s12 = smov 112  }
  0x11   : > { %421 = vrot.lane.b32.xlu1 %v3237_v1, %s3173_s23  ;;  %v352_v4 = vld [vmem:[%s284_s7] sm:$0xff]  ;;  %v3252_v5 = vld [vmem:[%s289_s27 + $0x18] sm:$0xff]  ;;  %369 = vst [vmem:[#allocation2 + $0x68] sm:$0xff] %v3237_v1  ;;  %v3263_v7 = vld [vmem:[%s289_s27 + $0x30] sm:$0xff]  ;;  %v3296_v17 = vpack.i.bf16 %v3246_v3, %v3237_v1  ;;  %v2928_v18 = vpack.i.bf16 %v3244_v2, %v3172_v0  ;;  %s3179_s13 = smov 113   ;;  %s3180_s14 = smov 127  }
  0x12   : > { %354 = vst [vmem:[#allocation1] ss:$2 sm:$0xff] %v352_v4  ;;  %v3259_v6 = vld [vmem:[%s289_s27 + $0x20] sm:$0xff]  ;;  %v3268_v8 = vld [vmem:[%s289_s27 + $0x28] sm:$0xff]  ;;  %v3271_v11 = vld [vmem:[%s289_s27 + $0x38] sm:$0xff]  ;;  %v2933_v15 = vpack.i.bf16 0.0, %v3252_v5  ;;  %v2943_v20 = vpack.i.bf16 %v3263_v7, %v3172_v0  ;;  %v2968_v41 = vpack.i.bf16 %v3252_v5, %v3244_v2  ;;  %s5153_s16 = scalar_lea.vmem %s5441_s6, %s3230_s24  ;;  %s5265_s19 = scalar_lea.vmem %s5440_s5, %s3230_s24 }
  0x13   : > { %371 = vst [vmem:[#allocation2 + $0x88] sm:$0xff] %v3244_v2  ;;  %v2938_v19 = vpack.i.bf16 %v3268_v8, %v3259_v6  ;;  %v2958_v39 = vpack.i.bf16 %v3271_v11, %v3263_v7 }
  0x14   : > { %427 = vrot.lane.b32.xlu0 %v3244_v2, %s3173_s23  ;;  %423 = vrot.lane.b32.xlu2 %v3246_v3, %s3173_s23  ;;  %370 = vst [vmem:[#allocation2 + $0x78] sm:$0xff] %v3246_v3 }
  0x15   : > { %372 = vst [vmem:[#allocation2 + $0x28] sm:$0xff] %v3252_v5 }
  0x16   : > { %373 = vst [vmem:[#allocation2 + $0x10] sm:$0xff] %v3259_v6 }
  0x17   : > { %375 = vst [vmem:[#allocation2 + $0x48] sm:$0xff] %v3263_v7 }
  0x18   : > { %374 = vst [vmem:[#allocation2 + $0x98] sm:$0xff] %v3268_v8 }
  0x19   : > { %429 = vrot.lane.b32.xlu1 %v3252_v5, %s3173_s23  ;;  %v355_v9 = vld.sshfl [vmem:[#allocation1] sm:$0xff pattern:$0x75316420]  ;;  %v356_v10 = vld.sshfl [vmem:[#allocation1 + $0x8] sm:$0xff pattern:$0x75316420] }
  0x1a   : > { %359 = vst [vmem:[#allocation2 + $0x38] sm:$0xf] %v355_v9 }
  0x1b   : > { %360 = vst [vmem:[#allocation2 + $0x50] sm:$0xf] %v356_v10 }
  0x1c   : > { %433 = vrot.lane.b32.xlu2 %v3259_v6, %s3173_s23  ;;  %376 = vst [vmem:[#allocation2 + $0x70] sm:$0xff] %v3271_v11 }
  0x21   : > { %v3276_v12 = vld [vmem:[#allocation2 + $0x38] sm:$0xff] }
  0x22   : > { %415 = vrot.lane.b32.xlu0 %v3276_v12, %s3173_s23  ;;  %v3280_v13 = vld [vmem:[#allocation2 + $0x50] sm:$0xff]  ;;  %v2913_v16 = vpack.i.bf16 %v3276_v12, %v3172_v0 }
  0x23   : > { %417 = vrot.lane.b32.xlu1 %v3280_v13, %s3173_s23  ;;  %v2918_v14 = vpack.i.bf16 0.0, %v3280_v13  ;;  %v2978_v36 = vpack.i.bf16 %v3280_v13, %v3276_v12 }
  0x24   : > { %439 = vrot.lane.b32.xlu2 %v3263_v7, %s3173_s23 }
  0x2a   : > { %435 = vrot.lane.b32.xlu0 %v3268_v8, %s3173_s23 }
  0x2b   : > { %437 = vrot.lane.b32.xlu1 %v3172_v0, %s3173_s23 }
  0x2c   : > { %2919 = vrot.lane.b32.xlu2 %v2918_v14, %s3174_s8 }
  0x32   : > { %441 = vrot.lane.b32.xlu0 %v3271_v11, %s3173_s23 }
  0x33   : > { %2914 = vrot.lane.b32.xlu1 %v2913_v16, %s3174_s8 }
  0x34   : > { %2934 = vrot.lane.b32.xlu2 %v2933_v15, %s3174_s8 }
  0x3a   : > { %2924 = vrot.lane.b32.xlu0 %v3296_v17, %s3174_s8 }
  0x3b   : > { %2929 = vrot.lane.b32.xlu1 %v2928_v18, %s3174_s8 }
  0x3c   : > { %542 = vrot.lane.b32.xlu2 %v3271_v11, %s3174_s8 }
  0x42   : > { %2939 = vrot.lane.b32.xlu0 %v2938_v19, %s3174_s8 }
  0x43   : > { %2944 = vrot.lane.b32.xlu1 %v2943_v20, %s3174_s8 }
  0x44   : > { %615 = vrot.lane.b32.xlu2 %v3280_v13, %s3175_s9 }
  0x4a   : > { %2949 = vrot.lane.b32.xlu0 %v3172_v0, %s3175_s9 }
  0x4b   : > { %613 = vrot.lane.b32.xlu1 %v3276_v12, %s3175_s9 }
  0x4c   : > { %2954 = vrot.lane.b32.xlu2 %v3172_v0, %s3175_s9 }
  0x52   : > { %619 = vrot.lane.b32.xlu0 %v3237_v1, %s3175_s9 }
  0x53   : > { %621 = vrot.lane.b32.xlu1 %v3246_v3, %s3175_s9 }
  0x54   : > { %631 = vrot.lane.b32.xlu2 %v3259_v6, %s3175_s9 }
  0x5a   : > { %625 = vrot.lane.b32.xlu0 %v3244_v2, %s3175_s9 }
  0x5b   : > { %627 = vrot.lane.b32.xlu1 %v3252_v5, %s3175_s9 }
  0x5c   : > { %637 = vrot.lane.b32.xlu2 %v3263_v7, %s3175_s9 }
  0x62   : > { %633 = vrot.lane.b32.xlu0 %v3268_v8, %s3175_s9 }
  0x63   : > { %635 = vrot.lane.b32.xlu1 %v3172_v0, %s3175_s9 }
  0x64   : > { %714 = vrot.lane.b32.xlu2 %v3276_v12, %s3176_s10 }
  0x66   : > { %v2910_v21 = vpop.permute.xlu2 %2909 }
  0x67   : > { %v2912_v23 = vunpack.i.h.bf16 %v2910_v21  ;;  %v2911_v30 = vunpack.i.l.bf16 %v2910_v21 }
  0x6a   : > { %639 = vrot.lane.b32.xlu0 %v3271_v11, %s3175_s9 }
  0x6b   : > { %712 = vrot.lane.b32.xlu1 %v3172_v0, %s3176_s10 }
  0x6c   : > { %1144 = vrot.lane.b32.xlu2 %v3259_v6, %s3177_s11 }
  0x6e   : > { %v424_v22 = vpop.permute.xlu2 %423 }
  0x72   : > { %1150 = vrot.lane.b32.xlu0 %v3263_v7, %s3177_s11 }
  0x73   : > { %1152 = vrot.lane.b32.xlu1 %v3271_v11, %s3177_s11 }
  0x74   : > { %1140 = vrot.lane.b32.xlu2 %v3252_v5, %s3177_s11 }
  0x76   : > { %v434_v24 = vpop.permute.xlu2 %433 }
  0x77   : > { %v3330_v25 = vsel %vm443_vm0, %v2912_v23, %v434_v24 }
  0x7a   : > { %1146 = vrot.lane.b32.xlu0 %v3268_v8, %s3177_s11 }
  0x7b   : > { %1138 = vrot.lane.b32.xlu1 %v3244_v2, %s3177_s11 }
  0x7c   : > { %1126 = vrot.lane.b32.xlu2 %v3276_v12, %s3177_s11 }
  0x7e   : > { %v2905_v26 = vpop.permute.xlu0 %2904  ;;  %v440_v27 = vpop.permute.xlu2 %439 }
  0x7f   : > { %v2907_v28 = vunpack.i.h.bf16 %v2905_v26  ;;  %v2906_v43 = vunpack.i.l.bf16 %v2905_v26 }
  0x82   : > { %1132 = vrot.lane.b32.xlu0 %v3237_v1, %s3177_s11 }
  0x83   : > { %v422_v29 = vpop.permute.xlu1 %421  ;;  %1134 = vrot.lane.b32.xlu1 %v3246_v3, %s3177_s11 }
  0x84   : > { %v3341_v31 = vsel %vm443_vm0, %v2907_v28, %v422_v29  ;;  %v3344_v32 = vsel %vm443_vm0, %v422_v29, %v424_v22  ;;  %2964 = vrot.lane.b32.xlu2 %v2938_v19, %s3178_s12 }
  0x86   : > { %v428_v33 = vpop.permute.xlu0 %427  ;;  %v2920_v34 = vpop.permute.xlu2 %2919 }
  0x87   : > { %v3350_v35 = vsel %vm443_vm0, %v2911_v30, %v428_v33  ;;  %v2921_v54 = vunpack.i.l.bf16 %v2920_v34  ;;  %v2922_v63 = vunpack.i.h.bf16 %v2920_v34 }
  0x8a   : > { %1128 = vrot.lane.b32.xlu0 %v3280_v13, %s3177_s11 }
  0x8b   : > { %v430_v37 = vpop.permute.xlu1 %429  ;;  %2959 = vrot.lane.b32.xlu1 %v2958_v39, %s3178_s12 }
  0x8c   : > { %v3357_v38 = vsel %vm443_vm0, %v428_v33, %v430_v37  ;;  %2979 = vrot.lane.b32.xlu2 %v2978_v36, %s3178_s12 }
  0x8e   : > { %v3362_v40 = vpop.permute.xlu2 %2934 }
  0x8f   : > { %v2936_v61 = vunpack.i.l.bf16 %v3362_v40 }
  0x92   : > { %2969 = vrot.lane.b32.xlu0 %v2968_v41, %s3178_s12 }
  0x93   : > { %2974 = vrot.lane.b32.xlu1 %v3296_v17, %s3178_s12 }
  0x94   : > { %952 = vrot.lane.b32.xlu2 %v3259_v6, %s3179_s13  ;;  %v416_v44 = vpop.permute.xlu0 %415 }
  0x95   : > { %v418_v45 = vpop.permute.xlu1 %417  ;;  %v3375_v46 = vsel %vm443_vm0, %v2906_v43, %v416_v44 }
  0x96   : > { %v543_v42 = vpop.permute.xlu2 %542  ;;  %v3378_v47 = vsel %vm443_vm0, %v416_v44, %v418_v45  ;;  %v305_v44 = vlaneseq }
  0x9a   : > { %958 = vrot.lane.b32.xlu0 %v3263_v7, %s3179_s13 }
  0x9b   : > { %960 = vrot.lane.b32.xlu1 %v3271_v11, %s3179_s13 }
  0x9c   : > { %948 = vrot.lane.b32.xlu2 %v3252_v5, %s3179_s13  ;;  %v436_v49 = vpop.permute.xlu0 %435 }
  0x9d   : > { %v438_v50 = vpop.permute.xlu1 %437  ;;  %v3387_v51 = vsel %vm443_vm0, %v434_v24, %v436_v49  ;;  %v3503_v49 = vand.u32 127, %v305_v44 }
  0x9e   : > { %v616_v48 = vpop.permute.xlu2 %615  ;;  %v3390_v52 = vsel %vm443_vm0, %v438_v50, %v440_v27 }
  0xa2   : > { %954 = vrot.lane.b32.xlu0 %v3268_v8, %s3179_s13 }
  0xa3   : > { %946 = vrot.lane.b32.xlu1 %v3244_v2, %s3179_s13 }
  0xa4   : > { %2984 = vrot.lane.b32.xlu2 %v3172_v0, %s3179_s13  ;;  %v442_v55 = vpop.permute.xlu0 %441 }
  0xa5   : > { %v3400_v56 = vpop.permute.xlu1 %2914  ;;  %v3403_v57 = vsel %vm443_vm0, %v440_v27, %v442_v55 }
  0xa6   : > { %v3394_v53 = vpop.permute.xlu2 %2954  ;;  %v2917_v58 = vunpack.i.h.bf16 %v3400_v56 }
  0xa8   : > { %v3411_v59 = vsel %vm544_vm1, %v2917_v58, %v2921_v54  ;;  %v312_v54 = vand.u32 15, %v3503_v49 }
  0xaa   : > { %716 = vrot.lane.b32.xlu0 %v3280_v13, %s3176_s10  ;;  %vm3518_vm4 = vcmp.ge.s32.totalorder %v312_v54, 1  ;;  %vm3526_vm5 = vcmp.lt.s32.totalorder %v312_v54, 15  ;;  %v2937_v54 = vunpack.i.h.bf16 %v3362_v40 }
  0xab   : > { %942 = vrot.lane.b32.xlu1 %v3246_v3, %s3179_s13 }
  0xac   : > { %2989 = vrot.lane.b32.xlu2 %v3172_v0, %s3180_s14  ;;  %v2925_v62 = vpop.permute.xlu0 %2924 }
  0xad   : > { %v2927_v4 = vunpack.i.h.bf16 %v2925_v62  ;;  %v2926_v9 = vunpack.i.l.bf16 %v2925_v62  ;;  %v3420_v10 = vpop.permute.xlu1 %2929  ;;  %v1950_v62 = vld [vmem:[%s5438_s3 + $0x50] sm:$0xff] }
  0xae   : > { %v3413_v60 = vpop.permute.xlu2 %631  ;;  %v2932_v14 = vunpack.i.h.bf16 %v3420_v10 }
  0xaf   : > { %v3426_v15 = vsel %vm544_vm1, %v2922_v63, %v2926_v9  ;;  %v3429_v16 = vsel %vm544_vm1, %v2926_v9, %v2927_v4  ;;  %v4154_v9 = vld [vmem:[%s5439_s4 + $0x68] sm:$0xff] }
  0xb0   : > { %v3434_v17 = vsel %vm544_vm1, %v2932_v14, %v2936_v61 }
  0xb2   : > { %936 = vrot.lane.b32.xlu0 %v3280_v13, %s3179_s13 }
  0xb3   : > { %859 = vrot.lane.b32.xlu1 %v3271_v11, %s3180_s14 }
  0xb4   : > { %847 = vrot.lane.b32.xlu2 %v3252_v5, %s3180_s14  ;;  %v3440_v19 = vpop.permute.xlu0 %2939 }
  0xb5   : > { %v2942_v20 = vunpack.i.h.bf16 %v3440_v19  ;;  %v2941_v21 = vunpack.i.l.bf16 %v3440_v19  ;;  %v3444_v22 = vpop.permute.xlu1 %2944 }
  0xb6   : > { %v638_v18 = vpop.permute.xlu2 %637  ;;  %v2947_v23 = vunpack.i.h.bf16 %v3444_v22 }
  0xb7   : > { %v3452_v24 = vsel %vm544_vm1, %v2941_v21, %v2942_v20  ;;  %v551_v40 = vsel %vm544_vm1, %v2937_v54, %v2941_v21  ;;  %v2916_v21 = vunpack.i.l.bf16 %v3400_v56 }
  0xb8   : > { %v3457_v26 = vsel %vm544_vm1, %v2947_v23, %v543_v42 }
  0xba   : > { %853 = vrot.lane.b32.xlu0 %v3268_v8, %s3180_s14 }
  0xbb   : > { %940 = vrot.lane.b32.xlu1 %v3237_v1, %s3179_s13 }
  0xbc   : > { %841 = vrot.lane.b32.xlu2 %v3246_v3, %s3180_s14  ;;  %v3465_v28 = vpop.permute.xlu0 %2949 }
  0xbd   : > { %v3467_v29 = vpop.permute.xlu1 %613 }
  0xbe   : > { %v3459_v27 = vpop.permute.xlu2 %714  ;;  %v3471_v30 = vsel %vm641_vm2, %v3467_v29, %v616_v48 }
  0xc2   : > { %2994 = vrot.lane.b32.xlu0 %v3172_v0, %s3180_s14 }
  0xc3   : > { %934 = vrot.lane.b32.xlu1 %v3276_v12, %s3179_s13 }
  0xc4   : > { %837 = vrot.lane.b32.xlu2 %v3172_v0, %s3180_s14  ;;  %v620_v34 = vpop.permute.xlu0 %619 }
  0xc5   : > { %v622_v36 = vpop.permute.xlu1 %621 }
  0xc6   : > { %v3475_v33 = vpop.permute.xlu2 %1144  ;;  %v3482_v37 = vsel %vm641_vm2, %v620_v34, %v622_v36 }
  0xca   : > { %857 = vrot.lane.b32.xlu0 %v3263_v7, %s3180_s14 }
  0xcb   : > { %835 = vrot.lane.b32.xlu1 %v3280_v13, %s3180_s14 }
  0xcc   : > { %2999 = vrot.lane.b32.xlu2 %v3172_v0, %s3177_s11  ;;  %v626_v41 = vpop.permute.xlu0 %625 }
  0xcd   : > { %v628_v42 = vpop.permute.xlu1 %627 }
  0xce   : > { %v3486_v39 = vpop.permute.xlu2 %1140  ;;  %v3493_v43 = vsel %vm641_vm2, %v626_v41, %v628_v42  ;;  %v2956_v42 = vunpack.i.l.bf16 %v3394_v53 }
  0xd2   : > { %851 = vrot.lane.b32.xlu0 %v3259_v6, %s3180_s14 }
  0xd3   : > { %845 = vrot.lane.b32.xlu1 %v3244_v2, %s3180_s14 }
  0xd4   : > { %3004 = vrot.lane.b32.xlu2 %v3172_v0, %s3177_s11  ;;  %v634_v48 = vpop.permute.xlu0 %633 }
  0xd5   : > { %v636_v13 = vpop.permute.xlu1 %635  ;;  %v3507_v50 = vsel %vm641_vm2, %v3413_v60, %v634_v48 }
  0xd6   : > { %v3497_v45 = vpop.permute.xlu2 %1126 }
  0xda   : > { %839 = vrot.lane.b32.xlu0 %v3237_v1, %s3180_s14 }
  0xdb   : > { %833 = vrot.lane.b32.xlu1 %v3276_v12, %s3180_s14  ;;  %v650_v12 = vsel %vm641_vm2, %v636_v13, %v638_v18 }
  0xdc   : > { %740 = vrot.lane.b32.xlu2 %v3271_v11, %s3176_s10  ;;  %v640_v61 = vpop.permute.xlu0 %639  ;;  %v2957_v11 = vunpack.i.h.bf16 %v3394_v53  ;;  %v646_v53 = vsel %vm641_vm2, %v2956_v42, %v626_v41 }
  0xdd   : > { %v713_v63 = vpop.permute.xlu1 %712  ;;  %v3523_v4 = vsel %vm641_vm2, %v638_v18, %v640_v61  ;;  %v2951_v18 = vunpack.i.l.bf16 %v3465_v28  ;;  %v2931_v61 = vunpack.i.l.bf16 %v3420_v10  ;;  %v545_v10 = vsel %vm544_vm1, %v2916_v21, %v2917_v58 }
  0xde   : > { %v3512_v55 = vpop.permute.xlu2 %2964  ;;  %v743_v20 = vsel %vm742_vm3, %v713_v63, %v3459_v27  ;;  %v648_v44 = vsel %vm641_vm2, %v2957_v11, %v3413_v60 }
  0xdf   : > { %2796 = vmatpush.msk.msra.mxu0 %vm3518_vm4, %v743_v20  ;;  %2856 = vmatpush.msk.msra.mxu1 %vm3518_vm4, %v743_v20  ;;  %v642_v41 = vsel %vm641_vm2, %v2951_v18, %v3467_v29 }
  0xe1   : > { %2797 = vmatpush.msk.msra.mxu0 %vm3526_vm5, %v650_v12  ;;  %2857 = vmatpush.msk.msra.mxu1 %vm3526_vm5, %v650_v12 }
  0xe2   : > { %1130 = vrot.lane.b32.xlu0 %v3172_v0, %s3177_s11 }
  0xe3   : > { %738 = vrot.lane.b32.xlu1 %v3263_v7, %s3176_s10  ;;  %2798 = vmatpush.msk.msra.mxu0 %vm3526_vm5, %v648_v44  ;;  %v2946_v7 = vunpack.i.l.bf16 %v3444_v22 }
  0xe4   : > { %734 = vrot.lane.b32.xlu2 %v3268_v8, %s3176_s10  ;;  %v2952_v8 = vunpack.i.h.bf16 %v3465_v28  ;;  %v1151_v48 = vpop.permute.xlu0 %1150  ;;  %2858 = vmatpush.msk.msra.mxu1 %vm3526_vm5, %v648_v44 }
  0xe5   : > { %v3559_v13 = vpop.permute.xlu1 %1152  ;;  %2799 = vmatpush.msk.msra.mxu0 %vm3526_vm5, %v646_v53  ;;  %v553_v29 = vsel %vm544_vm1, %v2946_v7, %v2947_v23 }
  0xe6   : > { %v3543_v36 = vpop.permute.xlu2 %2979  ;;  %2859 = vmatpush.msk.msra.mxu1 %vm3526_vm5, %v646_v53  ;;  %v644_v60 = vsel %vm641_vm2, %v2952_v8, %v620_v34  ;;  %v1165_v28 = vsel %vm1156_vm6, %v1151_v48, %v3559_v13 }
  0xe7   : > { %2800 = vmatpush.msk.msra.mxu0 %vm3526_vm5, %v644_v60  ;;  %2818 = vmatpush.msk.msra.mxu2 %vm3526_vm5, %v1165_v28  ;;  %v5442_v18 = vunpack.i.h.bf16 %v3543_v36  ;;  %v2981_v48 = vunpack.i.l.bf16 %v3543_v36 }
  0xe8   : > { %2860 = vmatpush.msk.msra.mxu1 %vm3526_vm5, %v644_v60  ;;  %2872 = vmatpush.msk.msra.mxu3 %vm3526_vm5, %v1165_v28 }
  0xe9   : > { %2801 = vmatpush.msk.msra.mxu0 %vm3526_vm5, %v642_v41  ;;  %v1066_v28 = vsel %vm1065_vm7, %v2981_v48, %v5442_v18 }
  0xea   : > { %3009 = vrot.lane.b32.xlu0 %v3172_v0, %s3178_s12  ;;  %2861 = vmatpush.msk.msra.mxu1 %vm3526_vm5, %v642_v41 }
  0xeb   : > { %732 = vrot.lane.b32.xlu1 %v3259_v6, %s3176_s10  ;;  %1441 = vmatpush.msra.mxu0 %v553_v29  ;;  %v549_v6 = vsel %vm544_vm1, %v2931_v61, %v2932_v14 }
  0xec   : > { %3014 = vrot.lane.b32.xlu2 %v3172_v0, %s3178_s12  ;;  %v3596_v63 = vpop.permute.xlu0 %1146  ;;  %2862 = vmatpush.msra.mxu1 %v553_v29  ;;  %v3181_v29 = vmov 0  }
  0xed   : > { %v1163_v11 = vsel %vm1156_vm6, %v3475_v33, %v3596_v63  ;;  %v1139_v20 = vpop.permute.xlu1 %1138  ;;  %1442 = vmatpush.msra.mxu0 %v551_v40  ;;  %3033 = vset.pattern.permute.xlu1 %v3181_v29 }
  0xee   : > { %v3583_v34 = vpop.permute.xlu2 %952  ;;  %2819 = vmatpush.msk.msra.mxu2 %vm3526_vm5, %v1163_v11  ;;  %2873 = vmatpush.msk.msra.mxu3 %vm3526_vm5, %v1163_v11  ;;  %v1161_v19 = vsel %vm1156_vm6, %v1139_v20, %v3486_v39  ;;  %v307_v11 = vadd.s32 128, %v3503_v49  ;;  %v3758_v49 = vld [vmem:[%s5438_s3 + $0xe8] sm:$0xff] }
  0xef   : > { %2863 = vmatpush.msra.mxu1 %v551_v40  ;;  %1443 = vmatpush.msra.mxu0 %v549_v6  ;;  %v3740_v40 = vld [vmem:[%s5439_s4] sm:$0xff] }
  0xf0   : > { %2820 = vmatpush.msk.msra.mxu2 %vm3526_vm5, %v1161_v19  ;;  %2874 = vmatpush.msk.msra.mxu3 %vm3526_vm5, %v1161_v19 }
  0xf1   : > { %2864 = vmatpush.msra.mxu1 %v549_v6  ;;  %1444 = vmatpush.msra.mxu0 %v3426_v15 }
  0xf2   : > { %726 = vrot.lane.b32.xlu0 %v3244_v2, %s3176_s10  ;;  %3034 = vset.pattern.permute.xlu2 %v3181_v29 }
  0xf3   : > { %2865 = vmatpush.msra.mxu1 %v3426_v15  ;;  %728 = vrot.lane.b32.xlu1 %v3252_v5, %s3176_s10 }
  0xf4   : > { %3019 = vrot.lane.b32.xlu2 %v3172_v0, %s3176_s10  ;;  %v1133_v14 = vpop.permute.xlu0 %1132  ;;  %1445 = vmatpush.msra.mxu0 %v545_v10 }
  0xf5   : > { %2866 = vmatpush.msra.mxu1 %v545_v10  ;;  %v3631_v23 = vpop.permute.xlu1 %1134  ;;  %3035 = vset.pattern.permute.xlu0 %v3181_v29  ;;  %v319_v10 = vand.u32 15, %v307_v11  ;;  %v3836_v11 = vld [vmem:[%s5439_s4 + $0x28] sm:$0xff] }
  0xf6   : > { %v3619_v22 = vpop.permute.xlu2 %948  ;;  %2802 = vmatpush.msk.msra.mxu0 %vm3518_vm4, %v3390_v52  ;;  %v1159_v2 = vsel %vm1156_vm6, %v1133_v14, %v3631_v23 }
  0xf7   : > { %2867 = vmatpush.msk.msra.mxu1 %vm3518_vm4, %v3390_v52  ;;  %2821 = vmatpush.msk.msra.mxu2 %vm3526_vm5, %v1159_v2  ;;  %v5445_v52 = vunpack.i.h.bf16 %v3512_v55  ;;  %vm3781_vm10 = vcmp.ge.s32.totalorder %v319_v10, 1  ;;  %vm3790_vm11 = vcmp.lt.s32.totalorder %v319_v10, 15 }
  0xf8   : > { %2803 = vmatpush.msk.msra.mxu0 %vm3518_vm4, %v3330_v25  ;;  %2875 = vmatpush.msk.msra.mxu3 %vm3526_vm5, %v1159_v2 }
  0xf9   : > { %2868 = vmatpush.msk.msra.mxu1 %vm3518_vm4, %v3330_v25  ;;  %v2966_v25 = vunpack.i.l.bf16 %v3512_v55 }
  0xfa   : > { %720 = vrot.lane.b32.xlu0 %v3237_v1, %s3176_s10  ;;  %2804 = vmatpush.msk.msra.mxu0 %vm3518_vm4, %v3350_v35 }
  0xfb   : > { %2869 = vmatpush.msk.msra.mxu1 %vm3518_vm4, %v3350_v35  ;;  %722 = vrot.lane.b32.xlu1 %v3246_v3, %s3176_s10  ;;  %v1072_v15 = vsel %vm1065_vm7, %v2966_v25, %v5445_v52  ;;  %v3779_v25 = vld [vmem:[%s5439_s4 + $0x18] sm:$0xff]  ;;  %v4141_v52 = vld [vmem:[%s5438_s3 + $0x90] sm:$0xff] }
  0xfc   : > { %v3665_v56 = vpop.permute.xlu0 %1128  ;;  %2805 = vmatpush.msk.msra.mxu0 %vm3518_vm4, %v3341_v31  ;;  %3029 = vrot.lane.b32.xlu2 %v3172_v0, %s3179_s13 }
  0xfd   : > { %2870 = vmatpush.msk.msra.mxu1 %vm3518_vm4, %v3341_v31  ;;  %v1157_v1 = vsel %vm1156_vm6, %v3497_v45, %v3665_v56  ;;  %v3678_v3 = vpop.permute.xlu1 %2959 }
  0xfe   : > { %v3651_v5 = vpop.permute.xlu2 %2984  ;;  %2822 = vmatpush.msk.msra.mxu2 %vm3526_vm5, %v1157_v1  ;;  %2876 = vmatpush.msk.msra.mxu3 %vm3526_vm5, %v1157_v1  ;;  %v5446_v35 = vunpack.i.h.bf16 %v3678_v3  ;;  %v2961_v58 = vunpack.i.l.bf16 %v3678_v3 }
  0xff   : > { %2806 = vmatpush.msk.msra.mxu0 %vm3518_vm4, %v3375_v46  ;;  %2871 = vmatpush.msk.msra.mxu1 %vm3518_vm4, %v3375_v46  ;;  %v2986_v2 = vunpack.i.l.bf16 %v3651_v5 }
 0x100   : > { %v1074_v31 = vsel %vm1065_vm7, %v2961_v58, %v5446_v35 }
 0x101   : > { %1573 = vmatpush.msra.mxu2 %v1074_v31  ;;  %2877 = vmatpush.msra.mxu3 %v1074_v31 }
 0x102   : > { %1039 = vrot.lane.b32.xlu0 %v3172_v0, %s3178_s12 }
 0x103   : > { %3024 = vrot.lane.b32.xlu1 %v3172_v0, %s3176_s10  ;;  %1574 = vmatpush.msra.mxu2 %v1072_v15 }
 0x104   : > { %v3704_v46 = vpop.permute.xlu0 %2969  ;;  %2878 = vmatpush.msra.mxu3 %v1072_v15 }
 0x105   : > { %v5444_v45 = vunpack.i.h.bf16 %v3704_v46  ;;  %v2971_v12 = vunpack.i.l.bf16 %v3704_v46  ;;  %v3708_v42 = vpop.permute.xlu1 %2974 }
 0x106   : > { %v3698_v33 = vpop.permute.xlu2 %2989  ;;  %v5443_v44 = vunpack.i.h.bf16 %v3708_v42  ;;  %v2976_v8 = vunpack.i.l.bf16 %v3708_v42 }
 0x107   : > { %v1070_v53 = vsel %vm1065_vm7, %v2971_v12, %v5444_v45  ;;  %v4134_v45 = vld [vmem:[%s5438_s3 + $0xb8] sm:$0xff]  ;;  %v4175_v12 = vld [vmem:[%s5438_s3 + $0xa8] sm:$0xff] }
 0x108   : > { %1575 = vmatpush.msra.mxu2 %v1070_v53  ;;  %2879 = vmatpush.msra.mxu3 %v1070_v53  ;;  %v1068_v7 = vsel %vm1065_vm7, %v2976_v8, %v5443_v44  ;;  %v3797_v8 = vld [vmem:[%s5438_s3 + $0xc0] sm:$0xff]  ;;  %v3811_v53 = vld [vmem:[%s5438_s3 + $0x28] sm:$0xff]  ;;  %v791_v44 = vld [vmem:[#allocation2 + $0x48] sm:$0xff] }
 0x109   : > { %1475 = vmatmul.f32.vlgmr.msra.gmra.mxu1 %v3797_v8 }
 0x10a   : > { %950 = vrot.lane.b32.xlu0 %v3172_v0, %s3179_s13  ;;  %1576 = vmatpush.msra.mxu2 %v1068_v7  ;;  %s4873_s13 = scalar_lea.vmem %s5437_s2, %s3230_s24 }
 0x10b   : > { %2880 = vmatpush.msra.mxu3 %v1068_v7  ;;  %1308 = vperm.xlu1 %3033, %v3740_v40   ;;  %v3816_v7 = vld [vmem:[%s5438_s3] sm:$0xff] }
 0x10c   : > { %v959_v41 = vpop.permute.xlu0 %958  ;;  %1577 = vmatpush.msra.mxu2 %v1066_v28  ;;  %1451 = vmatmul.f32.vlgmr.msra.gmra.mxu0 %v3816_v7 }
 0x10d   : > { %2881 = vmatpush.msra.mxu3 %v1066_v28  ;;  %v3727_v54 = vpop.permute.xlu1 %960 }
 0x10e   : > { %v3720_v60 = vpop.permute.xlu2 %847  ;;  %v973_v61 = vsel %vm964_vm8, %v959_v41, %v3727_v54  ;;  %v2991_v41 = vunpack.i.l.bf16 %v3698_v33 }
 0x10f   : > { %2823 = vmatpush.msk.msra.mxu2 %vm3518_vm4, %v973_v61  ;;  %2882 = vmatpush.msk.msra.mxu3 %vm3518_vm4, %v973_v61 }
 0x113   : > { %1323 = vperm.xlu1 %3033, %v3779_v25  }
 0x114   : > { %v3744_v20 = vpop.permute.xlu0 %954 }
 0x115   : > { %v971_v6 = vsel %vm964_vm8, %v3583_v34, %v3744_v20  ;;  %v947_v19 = vpop.permute.xlu1 %946  ;;  %v3763_v34 = vld [vmem:[%s5438_s3 + $0x10] sm:$0xff] }
 0x116   : > { %v3735_v0 = vpop.permute.xlu2 %841  ;;  %2824 = vmatpush.msk.msra.mxu2 %vm3518_vm4, %v971_v6  ;;  %2883 = vmatpush.msk.msra.mxu3 %vm3518_vm4, %v971_v6  ;;  %v969_v21 = vsel %vm964_vm8, %v947_v19, %v3619_v22 }
 0x118   : > { %2825 = vmatpush.msk.msra.mxu2 %vm3518_vm4, %v969_v21  ;;  %2884 = vmatpush.msk.msra.mxu3 %vm3518_vm4, %v969_v21 }
 0x119   : > { %2730 = vmatmul.msk.f32.vlgmr.msra.gmra.mxu3 %vm1386_vm9, %v3758_v49  ;;  %2721 = vmatmul.msk.f32.vlgmr.msra.gmra.mxu2 %vm1386_vm9, %v3763_v34 }
 0x11b   : > { %1333 = vperm.xlu1 %3033, %v3836_v11  }
 0x11c   : > { %v717_v58 = vpop.permute.xlu0 %716 }
 0x11d   : > { %v744_v31 = vsel %vm742_vm3, %v3459_v27, %v717_v58  ;;  %v3788_v15 = vpop.permute.xlu1 %942  ;;  %v3806_v27 = vld [vmem:[%s5438_s3 + $0x100] sm:$0xff] }
 0x11e   : > { %v3771_v14 = vpop.permute.xlu2 %837  ;;  %2826 = vmatpush.msk.msrb.mxu3 %vm3781_vm10, %v744_v31  ;;  %v968_v48 = vsel %vm964_vm8, %v3788_v15, %v2986_v2  ;;  %v3875_v2 = vld [vmem:[%s5438_s3 + $0x40] sm:$0xff] }
 0x11f   : > { %2837 = vmatpush.msk.msrb.mxu2 %vm3781_vm10, %v968_v48  ;;  %v3904_v48 = vld [vmem:[%s5439_s4 + $0x10] sm:$0xff] }
 0x120   : > { %2827 = vmatpush.msk.msrb.mxu3 %vm3790_vm11, %v3523_v4  ;;  %v2987_v4 = vunpack.i.h.bf16 %v3651_v5  ;;  %v3856_v5 = vld [vmem:[%s5438_s3 + $0xd8] sm:$0xff]  ;;  %1318 = vperm.xlu0 %3035, %v3904_v48  }
 0x121   : > { %2731 = vmatmul.msk.f32.gmra.mxu3 %vm1386_vm9, %v3806_v27  ;;  %2722 = vmatmul.msk.f32.gmra.mxu2 %vm1386_vm9, %v3811_v53 }
 0x122   : > { %2828 = vmatpush.msk.msrb.mxu3 %vm3790_vm11, %v3507_v50  ;;  %1478 = vmatmul.f32.gmra.mxu1 %v3856_v5 }
 0x124   : > { %v3840_v6 = vpop.permute.xlu0 %936  ;;  %2829 = vmatpush.msk.msrb.mxu3 %vm3790_vm11, %v3493_v43 }
 0x125   : > { %v966_v19 = vsel %vm964_vm8, %v3840_v6, %v2987_v4  ;;  %v3849_v21 = vpop.permute.xlu1 %859 }
 0x126   : > { %v3000_v28 = vpop.permute.xlu2 %2999  ;;  %2830 = vmatpush.msk.msrb.mxu3 %vm3790_vm11, %v3482_v37  ;;  %2838 = vmatpush.msk.msrb.mxu2 %vm3781_vm10, %v966_v19  ;;  %v873_v43 = vsel %vm863_vm12, %v3849_v21, %v2991_v41  ;;  %v3882_v37 = vld [vmem:[%s5438_s3 + $0x18] sm:$0xff] }
 0x127   : > { %v3002_v61 = vunpack.i.h.bf16 %v3000_v28  ;;  %v3001_v29 = vunpack.i.l.bf16 %v3000_v28  ;;  %1454 = vmatmul.f32.gmra.mxu0 %v3882_v37  ;;  %v2992_v28 = vunpack.i.h.bf16 %v3698_v33  ;;  %v3921_v33 = vld [vmem:[%s5438_s3 + $0xf0] sm:$0xff] }
 0x128   : > { %2831 = vmatpush.msk.msrb.mxu3 %vm3790_vm11, %v3471_v30  ;;  %2839 = vmatpush.msk.msrb.mxu2 %vm3790_vm11, %v873_v43  ;;  %v3899_v30 = vld [vmem:[%s5439_s4 + $0x40] sm:$0xff] }
 0x129   : > { %v1166_v50 = vsel %vm1156_vm6, %v3559_v13, %v3001_v29  ;;  %v3868_v13 = vld [vmem:[%s5438_s3 + $0x118] sm:$0xff]  ;;  %v1164_v10 = vsel %vm1156_vm6, %v3596_v63, %v3002_v61  ;;  %2723 = vmatmul.msk.f32.gmra.mxu2 %vm1386_vm9, %v3875_v2  ;;  %1348 = vperm.xlu1 %3033, %v3899_v30  }
 0x12a   : > { %2848 = vmatpush.msk.msrb.mxu0 %vm3790_vm11, %v1166_v50  ;;  %2732 = vmatmul.msk.f32.gmra.mxu3 %vm1386_vm9, %v3868_v13  ;;  %v3938_v50 = vld [vmem:[%s5438_s3 + $0x58] sm:$0xff] }
 0x12b   : > { %2138 = vmatpush.msrb.mxu3 %v3457_v26  ;;  %1481 = vmatmul.f32.gmra.mxu1 %v3921_v33 }
 0x12c   : > { %2849 = vmatpush.msk.msrb.mxu0 %vm3790_vm11, %v1164_v10  ;;  %v3909_v26 = vpop.permute.xlu0 %853 }
 0x12d   : > { %2139 = vmatpush.msrb.mxu3 %v3452_v24  ;;  %v871_v61 = vsel %vm863_vm12, %v3909_v26, %v2992_v28  ;;  %v941_v29 = vpop.permute.xlu1 %940 }
 0x12e   : > { %v3005_v63 = vpop.permute.xlu2 %3004  ;;  %2840 = vmatpush.msk.msrb.mxu2 %vm3790_vm11, %v871_v61  ;;  %v967_v24 = vsel %vm964_vm8, %v941_v29, %v3788_v15 }
 0x12f   : > { %v3007_v58 = vunpack.i.h.bf16 %v3005_v63  ;;  %v3006_v31 = vunpack.i.l.bf16 %v3005_v63  ;;  %2140 = vmatpush.msrb.mxu3 %v3434_v17  ;;  %2807 = vmatpush.msk.msrb.mxu1 %vm3518_vm4, %v967_v24  ;;  %v3947_v17 = vld [vmem:[%s5438_s3 + $0x30] sm:$0xff]  ;;  %v3980_v63 = vld [vmem:[%s5438_s3 + $0x148] sm:$0xff] }
 0x130   : > { %1457 = vmatmul.f32.gmra.mxu0 %v3947_v17  ;;  %5467 = vst [vmem:[#allocation4_spill] sm:$0xff] %v3980_v63 }
 0x131   : > { %v1162_v41 = vsel %vm1156_vm6, %v3486_v39, %v3006_v31  ;;  %v3931_v39 = vld [vmem:[%s5438_s3 + $0x130] sm:$0xff]  ;;  %v1160_v4 = vsel %vm1156_vm6, %v3631_v23, %v3007_v58  ;;  %2141 = vmatpush.msrb.mxu3 %v3429_v16  ;;  %2724 = vmatmul.msk.f32.gmra.mxu2 %vm1386_vm9, %v3938_v50  ;;  %v3960_v23 = vld [vmem:[%s5439_s4 + $0x8] sm:$0xff]  ;;  %v3965_v16 = vld [vmem:[%s5439_s4 + $0x38] sm:$0xff] }
 0x132   : > { %2850 = vmatpush.msk.msrb.mxu0 %vm3790_vm11, %v1162_v41  ;;  %2733 = vmatmul.msk.f32.gmra.mxu3 %vm1386_vm9, %v3931_v39  ;;  %v3985_v58 = vld [vmem:[%s5438_s3 + $0x70] sm:$0xff]  ;;  %v4006_v31 = vld [vmem:[%s5438_s3 + $0x108] sm:$0xff] }
 0x133   : > { %2142 = vmatpush.msrb.mxu3 %v3411_v59  ;;  %1313 = vperm.xlu2 %3034, %v3960_v23   ;;  %v4027_v41 = vld [vmem:[%s5439_s4 + $0x50] sm:$0xff] }
 0x134   : > { %2851 = vmatpush.msk.msrb.mxu0 %vm3790_vm11, %v1160_v4  ;;  %1343 = vperm.xlu0 %3035, %v3965_v16   ;;  %v2995_v15 = vpop.permute.xlu0 %2994  ;;  %v4045_v4 = vld [vmem:[%s5438_s3 + $0x160] sm:$0xff] }
 0x135   : > { %2832 = vmatpush.msk.msrb.mxu3 %vm3781_vm10, %v3403_v57  ;;  %v2997_v59 = vunpack.i.h.bf16 %v2995_v15  ;;  %v2996_v19 = vunpack.i.l.bf16 %v2995_v15  ;;  %v935_v43 = vpop.permute.xlu1 %934  ;;  %1484 = vmatmul.f32.gmra.mxu1 %v4006_v31  ;;  %5468 = vst [vmem:[#allocation5_spill] sm:$0xff] %v4045_v4  ;;  %v790_v15 = vld [vmem:[#allocation2 + $0x98] sm:$0xff] }
 0x136   : > { %v965_v10 = vsel %vm964_vm8, %v935_v43, %v3840_v6  ;;  %v4001_v6 = vld [vmem:[%s5438_s3 + $0x48] sm:$0xff]  ;;  %v788_v43 = vld [vmem:[#allocation2 + $0x28] sm:$0xff] }
 0x137   : > { %2833 = vmatpush.msk.msrb.mxu3 %vm3781_vm10, %v3387_v51  ;;  %v869_v57 = vsel %vm863_vm12, %v3720_v60, %v2996_v19  ;;  %2808 = vmatpush.msk.msrb.mxu1 %vm3518_vm4, %v965_v10  ;;  %v3996_v51 = vpop.permute.xlu2 %740  ;;  %v867_v28 = vsel %vm863_vm12, %v3735_v0, %v2997_v59  ;;  %v4057_v59 = vld [vmem:[%s5438_s3 + $0x60] sm:$0xff]  ;;  %v4073_v10 = vld [vmem:[%s5439_s4 + $0x30] sm:$0xff] }
 0x138   : > { %2841 = vmatpush.msk.msrb.mxu2 %vm3790_vm11, %v869_v57  ;;  %1460 = vmatmul.f32.gmra.mxu0 %v4001_v6  ;;  %v4078_v57 = vld [vmem:[%s5439_s4 + $0x58] sm:$0xff] }
 0x139   : > { %2834 = vmatpush.msk.msrb.mxu3 %vm3781_vm10, %v3357_v38  ;;  %2725 = vmatmul.msk.f32.gmra.mxu2 %vm1386_vm9, %v3985_v58  ;;  %v4022_v38 = vld [vmem:[%s5439_s4 + $0x20] sm:$0xff] }
 0x13a   : > { %2734 = vmatmul.msk.f32.gmra.mxu3 %vm1386_vm9, %v3980_v63  ;;  %2842 = vmatpush.msk.msrb.mxu2 %vm3790_vm11, %v867_v28 }
 0x13b   : > { %2835 = vmatpush.msk.msrb.mxu3 %vm3781_vm10, %v3344_v32  ;;  %1328 = vperm.xlu2 %3034, %v4022_v38  }
 0x13c   : > { %v858_v61 = vpop.permute.xlu0 %857  ;;  %1358 = vperm.xlu0 %3035, %v4027_v41   ;;  %1363 = vperm.xlu1 %3033, %v4078_v57  }
 0x13d   : > { %2836 = vmatpush.msk.msrb.mxu3 %vm3781_vm10, %v3378_v47  ;;  %v872_v32 = vsel %vm863_vm12, %v858_v61, %v3849_v21  ;;  %v836_v29 = vpop.permute.xlu1 %835  ;;  %v792_v47 = vld [vmem:[#allocation2 + $0x70] sm:$0xff]  ;;  %v4052_v21 = vld [vmem:[%s5438_s3 + $0x88] sm:$0xff]  ;;  %v786_v61 = vld [vmem:[#allocation2 + $0x78] sm:$0xff] }
 0x13e   : > { %2809 = vmatpush.msk.msrb.mxu1 %vm3526_vm5, %v872_v32  ;;  %v865_v24 = vsel %vm863_vm12, %v836_v29, %v3771_v14  ;;  %v4064_v14 = vld [vmem:[%s5438_s3 + $0x120] sm:$0xff] }
 0x13f   : > { %2843 = vmatpush.msk.msrb.mxu2 %vm3790_vm11, %v865_v24  ;;  %v4066_v19 = vpop.permute.xlu2 %734  ;;  %1487 = vmatmul.f32.gmra.mxu1 %v4064_v14 }
 0x140   : > { %1463 = vmatmul.f32.gmra.mxu0 %v4057_v59 }
 0x141   : > { %2204 = vmatpush.msrb.mxu2 %v792_v47  ;;  %v4091_v47 = vld [vmem:[%s5438_s3 + $0x178] sm:$0xff] }
 0x142   : > { %2735 = vmatmul.msk.f32.gmra.mxu3 %vm1386_vm9, %v4045_v4  ;;  %2726 = vmatmul.msk.f32.gmra.mxu2 %vm1386_vm9, %v4052_v21  ;;  %5469 = vst [vmem:[#allocation6_spill] sm:$0xff] %v4091_v47  ;;  %v5470_v4 = vunpack.i.h.bf16 %v3678_v3  ;;  %v1302_v3 = vld [vmem:[%s5439_s4 + $0x60] sm:$0xff] }
 0x143   : > { %2205 = vmatpush.msrb.mxu2 %v790_v15  ;;  %1338 = vperm.xlu2 %3034, %v4073_v10   ;;  %v784_v15 = vld [vmem:[#allocation2 + $0x50] sm:$0xff] }
 0x144   : > { %v852_v28 = vpop.permute.xlu0 %851  ;;  %1373 = vperm.xlu0 %3035, %v4154_v9  }
 0x145   : > { %v870_v32 = vsel %vm863_vm12, %v852_v28, %v3909_v26  ;;  %v846_v24 = vpop.permute.xlu1 %845  ;;  %2206 = vmatpush.msrb.mxu2 %v788_v43  ;;  %v4098_v26 = vld [vmem:[%s5438_s3 + $0xa0] sm:$0xff]  ;;  %v4105_v43 = vld [vmem:[%s5438_s3 + $0x78] sm:$0xff] }
 0x146   : > { %2810 = vmatpush.msk.msrb.mxu1 %vm3526_vm5, %v870_v32  ;;  %v868_v18 = vsel %vm863_vm12, %v846_v24, %v3720_v60  ;;  %v4112_v60 = vld [vmem:[%s5438_s3 + $0x138] sm:$0xff] }
 0x147   : > { %2207 = vmatpush.msrb.mxu2 %v786_v61  ;;  %v4122_v28 = vpop.permute.xlu2 %3014  ;;  %1490 = vmatmul.f32.gmra.mxu1 %v4112_v60 }
 0x148   : > { %2811 = vmatpush.msk.msrb.mxu1 %vm3526_vm5, %v868_v18  ;;  %v4119_v18 = vld [vmem:[%s5439_s4 + $0x48] sm:$0xff]  ;;  %1466 = vmatmul.f32.gmra.mxu0 %v4105_v43 }
 0x149   : > { %2208 = vmatpush.msrb.mxu2 %v784_v15 }
 0x14a   : > { %2736 = vmatmul.msk.f32.gmra.mxu3 %vm1386_vm9, %v4091_v47  ;;  %2727 = vmatmul.msk.f32.gmra.mxu2 %vm1386_vm9, %v4098_v26 }
 0x14b   : > { %1353 = vperm.xlu2 %3034, %v4119_v18  }
 0x14c   : > { %v840_v61 = vpop.permute.xlu0 %839  ;;  %2006 = vperm.xlu0 %3035, %v3740_v40   ;;  %v3017_v40 = vunpack.i.h.bf16 %v4122_v28 }
 0x14d   : > { %v866_v32 = vsel %vm863_vm12, %v840_v61, %v3735_v0  ;;  %v834_v24 = vpop.permute.xlu1 %833  ;;  %v789_v0 = vld [vmem:[#allocation2 + $0x10] sm:$0xff]  ;;  %v787_v61 = vld [vmem:[#allocation2 + $0x88] sm:$0xff] }
 0x14e   : > { %2812 = vmatpush.msk.msrb.mxu1 %vm3526_vm5, %v866_v32  ;;  %v864_v15 = vsel %vm863_vm12, %v834_v24, %v836_v29  ;;  %v4149_v29 = vld [vmem:[%s5438_s3 + $0x150] sm:$0xff] }
 0x14f   : > { %v785_v24 = vld [vmem:[#allocation2 + $0x68] sm:$0xff]  ;;  %1493 = vmatmul.f32.gmra.mxu1 %v4149_v29 }
 0x150   : > { %2813 = vmatpush.msk.msrb.mxu1 %vm3526_vm5, %v864_v15  ;;  %1469 = vmatmul.f32.gmra.mxu0 %v4141_v52  ;;  %v3020_v15 = vpop.permute.xlu2 %3019 }
 0x151   : > { %v3021_v47 = vunpack.i.l.bf16 %v3020_v15 }
 0x152   : > { %2148 = vmatmul.f32.vlgmr.msrb.gmra.mxu3 %v3816_v7  ;;  %1507 = vmatpush.msrb.mxu1 %v791_v44 }
 0x153   : > { %2728 = vmatmul.msk.f32.gmra.mxu2 %vm1386_vm9, %v4134_v45  ;;  %1368 = vperm.xlu2 %3034, %v1302_v3  }
 0x154   : > { %v1131_v7 = vpop.permute.xlu0 %1130  ;;  %1508 = vmatpush.msrb.mxu1 %v789_v0  ;;  %v783_v0 = vld [vmem:[#allocation2 + $0x38] sm:$0xff]  ;;  %2021 = vperm.xlu0 %3035, %v3779_v25  }
 0x155   : > { %v1158_v44 = vsel %vm1156_vm6, %v3665_v56, %v1131_v7  ;;  %v739_v32 = vpop.permute.xlu1 %738  ;;  %v4170_v56 = vld [vmem:[%s5438_s3 + $0xd0] sm:$0xff] }
 0x156   : > { %2852 = vmatpush.msk.msrb.mxu0 %vm3790_vm11, %v1158_v44  ;;  %1509 = vmatpush.msrb.mxu1 %v787_v61  ;;  %v752_v35 = vsel %vm742_vm3, %v739_v32, %v3996_v51  ;;  %v3022_v61 = vunpack.i.h.bf16 %v3020_v15  ;;  %v4188_v51 = vld [vmem:[%s5439_s4 + $0x70] sm:$0xff]  ;;  %v751_v7 = vsel %vm742_vm3, %v3021_v47, %v739_v32  ;;  %v3016_v32 = vunpack.i.l.bf16 %v4122_v28 }
 0x157   : > { %2844 = vmatpush.msk.msrb.mxu2 %vm3781_vm10, %v752_v35  ;;  %v4183_v35 = vld [vmem:[%s5438_s3 + $0x168] sm:$0xff]  ;;  %1378 = vperm.xlu1 %3033, %v4188_v51  }
 0x158   : > { %1510 = vmatpush.msrb.mxu1 %v785_v24  ;;  %1472 = vmatmul.f32.gmra.mxu0 %v4175_v12 }
 0x159   : > { %1496 = vmatmul.f32.gmra.mxu1 %v4183_v35 }
 0x15a   : > { %2151 = vmatmul.f32.gmra.mxu3 %v3882_v37  ;;  %1511 = vmatpush.msrb.mxu1 %v783_v0 }
 0x15b   : > { %2729 = vmatmul.msk.f32.gmra.mxu2 %vm1386_vm9, %v4170_v56 }
 0x15c   : > { %v3010_v37 = vpop.permute.xlu0 %3009  ;;  %2814 = vmatpush.msk.msrb.mxu1 %vm3518_vm4, %v751_v7  ;;  %v5471_v7 = vunpack.i.h.bf16 %v3512_v55  ;;  %v5473_v55 = vunpack.i.h.bf16 %v3708_v42  ;;  %2036 = vperm.xlu0 %3035, %v4073_v10   ;;  %v1941_v42 = vld [vmem:[%s5438_s3 + $0x8] sm:$0xff] }
 0x15d   : > { %v3012_v44 = vunpack.i.h.bf16 %v3010_v37  ;;  %v3011_v24 = vunpack.i.l.bf16 %v3010_v37  ;;  %v733_v15 = vpop.permute.xlu1 %732 }
 0x15e   : > { %v750_v0 = vsel %vm742_vm3, %v733_v15, %v4066_v19  ;;  %v749_v47 = vsel %vm742_vm3, %v3022_v61, %v733_v15 }
 0x15f   : > { %v1075_v63 = vsel %vm1065_vm7, %v5470_v4, %v3011_v24  ;;  %2845 = vmatpush.msk.msrb.mxu2 %vm3781_vm10, %v750_v0  ;;  %2815 = vmatpush.msk.msrb.mxu1 %vm3518_vm4, %v749_v47  ;;  %v1073_v19 = vsel %vm1065_vm7, %v5471_v7, %v3012_v44  ;;  %v5472_v4 = vunpack.i.h.bf16 %v3704_v46  ;;  %v3030_v44 = vpop.permute.xlu2 %3029  ;;  %v5474_v24 = vunpack.i.h.bf16 %v3543_v36  ;;  %v1944_v47 = vld [vmem:[%s5438_s3 + $0x20] sm:$0xff] }
 0x160   : > { %2270 = vmatpush.msrb.mxu0 %v1075_v63  ;;  %2011 = vperm.xlu1 %3033, %v3960_v23   ;;  %v3032_v10 = vunpack.i.h.bf16 %v3030_v44 }
 0x161   : > { %v1071_v61 = vsel %vm1065_vm7, %v5472_v4, %v3016_v32 }
 0x162   : > { %2154 = vmatmul.f32.gmra.mxu3 %v3947_v17  ;;  %2271 = vmatpush.msrb.mxu0 %v1073_v19  ;;  %v1069_v17 = vsel %vm1065_vm7, %v5473_v55, %v3017_v40  ;;  %v972_v36 = vsel %vm964_vm8, %v3744_v20, %v3032_v10 }
 0x164   : > { %v727_v63 = vpop.permute.xlu0 %726  ;;  %2272 = vmatpush.msrb.mxu0 %v1071_v61  ;;  %2051 = vperm.xlu0 %3035, %v4119_v18   ;;  %v1974_v61 = vld [vmem:[%s5438_s3 + $0x110] sm:$0xff] }
 0x165   : > { %v729_v28 = vpop.permute.xlu1 %728 }
 0x166   : > { %2273 = vmatpush.msrb.mxu0 %v1069_v17  ;;  %v748_v37 = vsel %vm742_vm3, %v727_v63, %v729_v28  ;;  %v1977_v28 = vld [vmem:[%s5438_s3 + $0x128] sm:$0xff] }
 0x167   : > { %2846 = vmatpush.msk.msrb.mxu2 %vm3781_vm10, %v748_v37 }
 0x168   : > { %2026 = vperm.xlu1 %3033, %v4022_v38  }
 0x16a   : > { %2157 = vmatmul.f32.gmra.mxu3 %v4001_v6  ;;  %v3031_v6 = vunpack.i.l.bf16 %v3030_v44 }
 0x16c   : > { %v721_v46 = vpop.permute.xlu0 %720  ;;  %2066 = vperm.xlu0 %3035, %v1302_v3   ;;  %v1971_v3 = vld [vmem:[%s5438_s3 + $0xf8] sm:$0xff] }
 0x16d   : > { %v723_v23 = vpop.permute.xlu1 %722 }
 0x16e   : > { %v746_v25 = vsel %vm742_vm3, %v721_v46, %v723_v23 }
 0x16f   : > { %2847 = vmatpush.msk.msrb.mxu2 %vm3781_vm10, %v746_v25  ;;  %v1980_v25 = vld [vmem:[%s5438_s3 + $0x140] sm:$0xff] }
 0x170   : > { %2213 = vmatmul.f32.vlgmr.msrb.gmra.mxu2 %v1941_v42  ;;  %2041 = vperm.xlu1 %3033, %v3965_v16  }
 0x172   : > { %2160 = vmatmul.f32.gmra.mxu3 %v4057_v59  ;;  %v974_v59 = vsel %vm964_vm8, %v3727_v54, %v3031_v6  ;;  %v1305_v54 = vld [vmem:[%s5439_s4 + $0x78] sm:$0xff] }
 0x173   : > { %1383 = vperm.xlu2 %3034, %v1305_v54  }
 0x174   : > { %v1040_v38 = vpop.permute.xlu0 %1039  ;;  %2081 = vperm.xlu0 %3035, %v1305_v54  }
 0x175   : > { %v1067_v15 = vsel %vm1065_vm7, %v5474_v24, %v1040_v38  ;;  %v3025_v0 = vpop.permute.xlu1 %3024  ;;  %v1983_v24 = vld [vmem:[%s5438_s3 + $0x158] sm:$0xff] }
 0x176   : > { %2274 = vmatpush.msrb.mxu0 %v1067_v15  ;;  %v3027_v32 = vunpack.i.h.bf16 %v3025_v0  ;;  %v3026_v40 = vunpack.i.l.bf16 %v3025_v0 }
 0x178   : > { %2853 = vmatpush.msk.msrb.mxu0 %vm3781_vm10, %v974_v59  ;;  %2216 = vmatmul.f32.gmra.mxu2 %v1944_v47  ;;  %v747_v16 = vsel %vm742_vm3, %v3026_v40, %v727_v63  ;;  %v745_v18 = vsel %vm742_vm3, %v3027_v32, %v721_v46  ;;  %v1986_v32 = vld [vmem:[%s5438_s3 + $0x170] sm:$0xff] }
 0x179   : > { %2816 = vmatpush.msk.msrb.mxu1 %vm3518_vm4, %v747_v16  ;;  %2056 = vperm.xlu1 %3033, %v4027_v41  }
 0x17a   : > { %2163 = vmatmul.f32.gmra.mxu3 %v4105_v43  ;;  %2854 = vmatpush.msk.msrb.mxu0 %vm3781_vm10, %v972_v36  ;;  %v1947_v43 = vld [vmem:[%s5438_s3 + $0x38] sm:$0xff] }
 0x17b   : > { %2817 = vmatpush.msk.msrb.mxu1 %vm3518_vm4, %v745_v18  ;;  %2016 = vperm.xlu2 %3034, %v3904_v48   ;;  %v5480_v18 = vld [vmem:[#allocation4_spill] sm:$0xff] }
 0x17c   : > { %v951_v7 = vpop.permute.xlu0 %950  ;;  %1516 = vmatmul.f32.vlgmr.msrb.gmra.mxu1 %v1941_v42 }
 0x17d   : > { %v970_v20 = vsel %vm964_vm8, %v3619_v22, %v951_v7  ;;  %v1953_v22 = vld [vmem:[%s5438_s3 + $0x68] sm:$0xff]  ;;  %v4331_v41 = vpop.permute.xlu1 %1308 }
 0x17e   : > { %2855 = vmatpush.msk.msrb.mxu0 %vm3781_vm10, %v970_v20 }
 0x17f   : > { %2749 = vmatmul.msk.f32.vlgmr.msrb.gmra.mxu0 %vm1386_vm9, %v3763_v34 }
 0x180   : > { %2219 = vmatmul.f32.gmra.mxu2 %v1947_v43 }
 0x181   : > { %2071 = vperm.xlu1 %3033, %v4154_v9   ;;  %v1968_v9 = vld [vmem:[%s5438_s3 + $0xe0] sm:$0xff] }
 0x182   : > { %2166 = vmatmul.f32.gmra.mxu3 %v4141_v52  ;;  %v1956_v52 = vld [vmem:[%s5438_s3 + $0x80] sm:$0xff] }
 0x183   : > { %2031 = vperm.xlu2 %3034, %v3836_v11  }
 0x184   : > { %1519 = vmatmul.f32.gmra.mxu1 %v1944_v47 }
 0x186   : > { %v4322_v48 = vpop.f32.mrf.mxu1 }
 0x187   : > { %2750 = vmatmul.msk.f32.gmra.mxu0 %vm1386_vm9, %v3811_v53 }
 0x188   : > { %2222 = vmatmul.f32.gmra.mxu2 %v1950_v62 }
 0x189   : > { %v4304_v53 = vpop.f32.mrf.mxu0 }
 0x18a   : > { %2169 = vmatmul.f32.gmra.mxu3 %v4175_v12 }
 0x18b   : > { %2046 = vperm.xlu2 %3034, %v3899_v30  }
 0x18c   : > { %1522 = vmatmul.f32.gmra.mxu1 %v1947_v43 }
 0x18d   : > { %v4373_v55 = vpop.permute.xlu2 %1313 }
 0x18f   : > { %2751 = vmatmul.msk.f32.gmra.mxu0 %vm1386_vm9, %v3875_v2  ;;  %v1962_v2 = vld [vmem:[%s5438_s3 + $0xb0] sm:$0xff] }
 0x190   : > { %2225 = vmatmul.f32.gmra.mxu2 %v1953_v22 }
 0x192   : > { %2172 = vmatmul.f32.gmra.mxu3 %v3797_v8  ;;  %v1959_v8 = vld [vmem:[%s5438_s3 + $0x98] sm:$0xff] }
 0x193   : > { %2061 = vperm.xlu2 %3034, %v4078_v57  }
 0x194   : > { %1525 = vmatmul.f32.gmra.mxu1 %v1950_v62  ;;  %v5481_v62 = vld [vmem:[#allocation5_spill] sm:$0xff] }
 0x195   : > { %v4389_v37 = vpop.permute.xlu2 %1328 }
 0x197   : > { %2752 = vmatmul.msk.f32.gmra.mxu0 %vm1386_vm9, %v3938_v50  ;;  %v1965_v50 = vld [vmem:[%s5438_s3 + $0xc8] sm:$0xff] }
 0x198   : > { %2228 = vmatmul.f32.gmra.mxu2 %v1956_v52 }
 0x19a   : > { %2175 = vmatmul.f32.gmra.mxu3 %v3856_v5 }
 0x19b   : > { %2076 = vperm.xlu2 %3034, %v4188_v51  }
 0x19c   : > { %v4297_v34 = vpop.f32.mrf.mxu3  ;;  %1528 = vmatmul.f32.gmra.mxu1 %v1953_v22  ;;  %v4299_v1 = vpop.f32.mrf.mxu2 }
 0x19d   : > { %v4406_v6 = vpop.permute.xlu2 %1338 }
 0x19f   : > { %2753 = vmatmul.msk.f32.gmra.mxu0 %vm1386_vm9, %v3985_v58 }
 0x1a0   : > { %2231 = vmatmul.f32.gmra.mxu2 %v1959_v8 }
 0x1a2   : > { %2178 = vmatmul.f32.gmra.mxu3 %v3921_v33 }
 0x1a4   : > { %v4310_v11 = vpop.f32.mrf.mxu3  ;;  %1531 = vmatmul.f32.gmra.mxu1 %v1956_v52  ;;  %v4312_v5 = vpop.f32.mrf.mxu2 }
 0x1a5   : > { %v4319_v30 = vpop.f32.mrf.mxu0  ;;  %v4428_v16 = vpop.permute.xlu2 %1353 }
 0x1a7   : > { %2754 = vmatmul.msk.f32.gmra.mxu0 %vm1386_vm9, %v4052_v21 }
 0x1a8   : > { %2234 = vmatmul.f32.gmra.mxu2 %v1962_v2 }
 0x1aa   : > { %2181 = vmatmul.f32.gmra.mxu3 %v4006_v31  ;;  %v4338_v31 = vpop.f32.mrf.mxu1 }
 0x1ac   : > { %1534 = vmatmul.f32.gmra.mxu1 %v1959_v8  ;;  %v4329_v58 = vpop.f32.mrf.mxu2 }
 0x1ad   : > { %v4324_v33 = vpop.f32.mrf.mxu3  ;;  %v4335_v21 = vpop.f32.mrf.mxu0 }
 0x1ae   : > { %5475 = vst [vmem:[#allocation7_spill] sm:$0xff] %v4324_v33  ;;  %v4438_v43 = vpop.permute.xlu2 %1368 }
 0x1af   : > { %2755 = vmatmul.msk.f32.gmra.mxu0 %vm1386_vm9, %v4098_v26  ;;  %v1324_v26 = vpop.permute.xlu1 %1323 }
 0x1b0   : > { %2237 = vmatmul.f32.gmra.mxu2 %v1965_v50 }
 0x1b2   : > { %2184 = vmatmul.f32.gmra.mxu3 %v4064_v14  ;;  %v4357_v4 = vpop.f32.mrf.mxu1 }
 0x1b4   : > { %1537 = vmatmul.f32.gmra.mxu1 %v1962_v2  ;;  %v4347_v12 = vpop.f32.mrf.mxu2 }
 0x1b5   : > { %v4340_v57 = vpop.f32.mrf.mxu3  ;;  %v1461_v51 = vpop.f32.mrf.mxu0 }
 0x1b6   : > { %5476 = vst [vmem:[#allocation8_spill] sm:$0xff] %v4340_v57  ;;  %v4350_v14 = vadd.f32 %v1461_v51, %v1324_v26  ;;  %v5482_v51 = vld [vmem:[#allocation6_spill] sm:$0xff] }
 0x1b7   : > { %2756 = vmatmul.msk.f32.gmra.mxu0 %vm1386_vm9, %v4134_v45  ;;  %v4395_v42 = vpop.permute.xlu1 %1333 }
 0x1b8   : > { %2240 = vmatmul.f32.gmra.mxu2 %v1968_v9 }
 0x1ba   : > { %2187 = vmatmul.f32.gmra.mxu3 %v4112_v60  ;;  %v4371_v63 = vpop.f32.mrf.mxu1 }
 0x1bc   : > { %1540 = vmatmul.f32.gmra.mxu1 %v1965_v50  ;;  %v4362_v45 = vpop.f32.mrf.mxu2 }
 0x1bd   : > { %v4352_v19 = vpop.f32.mrf.mxu3  ;;  %v4393_v23 = vpop.f32.mrf.mxu0 }
 0x1be   : > { %5477 = vst [vmem:[#allocation9_spill] sm:$0xff] %v4352_v19 }
 0x1bf   : > { %2757 = vmatmul.msk.f32.gmra.mxu0 %vm1386_vm9, %v4170_v56  ;;  %v4375_v56 = vpop.permute.xlu0 %1318  ;;  %v4415_v0 = vpop.permute.xlu1 %1348 }
 0x1c0   : > { %2243 = vmatmul.f32.gmra.mxu2 %v1971_v3 }
 0x1c2   : > { %2190 = vmatmul.f32.gmra.mxu3 %v4149_v29 }
 0x1c4   : > { %1543 = vmatmul.f32.gmra.mxu1 %v1968_v9 }
 0x1c5   : > { %v4364_v60 = vpop.f32.mrf.mxu3  ;;  %v4378_v29 = vpop.f32.mrf.mxu2 }
 0x1c6   : > { %5478 = vst [vmem:[#allocation10_spill] sm:$0xff] %v4364_v60  ;;  %v4413_v15 = vpop.f32.mrf.mxu0 }
 0x1c7   : > { %2758 = vmatmul.msk.f32.gmra.mxu0 %vm1386_vm9, %v3758_v49  ;;  %v4387_v49 = vpop.f32.mrf.mxu1  ;;  %v4391_v46 = vpop.permute.xlu0 %1343 }
 0x1c8   : > { %2246 = vmatmul.f32.gmra.mxu2 %v1974_v61  ;;  %v4430_v36 = vpop.permute.xlu1 %1363 }
 0x1ca   : > { %2193 = vmatmul.f32.gmra.mxu3 %v4183_v35 }
 0x1cc   : > { %1546 = vmatmul.f32.gmra.mxu1 %v1971_v3 }
 0x1cd   : > { %v4380_v17 = vpop.f32.mrf.mxu3  ;;  %v4400_v44 = vpop.f32.mrf.mxu2 }
 0x1ce   : > { %5479 = vst [vmem:[#allocation11_spill] sm:$0xff] %v4380_v17  ;;  %v4452_v3 = vpop.permute.xlu2 %1383 }
 0x1cf   : > { %2759 = vmatmul.msk.f32.gmra.mxu0 %vm1386_vm9, %v3806_v27  ;;  %v4404_v27 = vpop.f32.mrf.mxu1  ;;  %v4408_v10 = vpop.permute.xlu0 %1358 }
 0x1d0   : > { %2249 = vmatmul.f32.gmra.mxu2 %v1977_v28  ;;  %v4442_v22 = vpop.permute.xlu1 %1378 }
 0x1d4   : > { %1549 = vmatmul.f32.gmra.mxu1 %v1974_v61 }
 0x1d5   : > { %v2149_v35 = vpop.f32.mrf.mxu3 }
 0x1d7   : > { %2760 = vmatmul.msk.f32.gmra.mxu0 %vm1386_vm9, %v3868_v13  ;;  %v4419_v13 = vpop.f32.mrf.mxu2  ;;  %v4424_v40 = vpop.permute.xlu0 %1373 }
 0x1d8   : > { %2252 = vmatmul.f32.gmra.mxu2 %v1980_v25  ;;  %v4426_v59 = vpop.f32.mrf.mxu1  ;;  %v2012_v61 = vpop.permute.xlu1 %2011 }
 0x1dc   : > { %1552 = vmatmul.f32.gmra.mxu1 %v1977_v28  ;;  %v1453_v28 = vadd.f32 %v4304_v53, %v4331_v41 }
 0x1dd   : > { %v2152_v38 = vpop.f32.mrf.mxu3 }
 0x1df   : > { %2761 = vmatmul.msk.f32.gmra.mxu0 %vm1386_vm9, %v3931_v39  ;;  %v4434_v39 = vpop.f32.mrf.mxu0  ;;  %v4436_v54 = vpop.f32.mrf.mxu2 }
 0x1e0   : > { %2255 = vmatmul.f32.gmra.mxu2 %v1983_v24  ;;  %v2007_v20 = vpop.permute.xlu0 %2006  ;;  %v4444_v52 = vpop.f32.mrf.mxu1 }
 0x1e1   : > { %v2150_v8 = vadd.f32 %v2149_v35, %v2007_v20 }
 0x1e4   : > { %1555 = vmatmul.f32.gmra.mxu1 %v1980_v25  ;;  %v2153_v25 = vadd.f32 %v2152_v38, %v2012_v61 }
 0x1e5   : > { %v2155_v47 = vpop.f32.mrf.mxu3 }
 0x1e7   : > { %2762 = vmatmul.msk.f32.gmra.mxu0 %vm1386_vm9, %v5480_v18  ;;  %v4446_v2 = vpop.f32.mrf.mxu0 }
 0x1e8   : > { %2258 = vmatmul.f32.gmra.mxu2 %v1986_v32 }
 0x1ec   : > { %1558 = vmatmul.f32.gmra.mxu1 %v1983_v24 }
 0x1ed   : > { %v2158_v7 = vpop.f32.mrf.mxu3 }
 0x1ef   : > { %2763 = vmatmul.msk.f32.gmra.mxu0 %vm1386_vm9, %v5481_v62 }
 0x1f3   : > { %v2214_v50 = vpop.f32.mrf.mxu2 }
 0x1f4   : > { %1561 = vmatmul.f32.gmra.mxu1 %v1986_v32  ;;  %v2215_v26 = vadd.f32 %v2214_v50, %v2150_v8  ;;  %v2017_v32 = vpop.permute.xlu2 %2016  ;;  %v1456_v8 = vadd.f32 %v4319_v30, %v4373_v55 }
 0x1f5   : > { %v4448_v9 = vpop.f32.mrf.mxu3 }
 0x1f7   : > { %2764 = vmatmul.msk.f32.gmra.mxu0 %vm1386_vm9, %v5482_v51  ;;  %v2156_v51 = vadd.f32 %v2155_v47, %v2017_v32 }
 0x1f9   : > { %v1517_v24 = vpop.f32.mrf.mxu1 }
 0x1fa   : > { %v1518_v18 = vadd.f32 %v1517_v24, %v1453_v28 }
 0x1fb   : > { %v2217_v35 = vpop.f32.mrf.mxu2 }
 0x1fc   : > { %v2279_v20 = vpop.f32.mrf.mxu0  ;;  %v2218_v17 = vadd.f32 %v2217_v35, %v2153_v25  ;;  %v1583_v50 = vadd.f32 %v4299_v1, %v1518_v18  ;;  %v1459_v35 = vadd.f32 %v4335_v21, %v4375_v56 }
 0x1fd   : > { %v4456_v62 = vpop.f32.mrf.mxu3  ;;  %v2280_v60 = vadd.f32 %v2279_v20, %v2215_v26  ;;  %v2022_v26 = vpop.permute.xlu0 %2021 }
 0x1fe   : > { %v2737_v53 = vmul.f32 -1.442695, %v1583_v50  ;;  %v2159_v30 = vadd.f32 %v2158_v7, %v2022_v26  ;;  %v2027_v26 = vpop.permute.xlu1 %2026 }
 0x1ff   : > { %v2765_v28 = vmul.f32 -1.442695, %v2280_v60 }
 0x200   : > { %3036 = vpow2.f32 %v2737_v53 }
 0x201   : > { %v1520_v19 = vpop.f32.mrf.mxu1  ;;  %3038 = vpow2.f32 %v2765_v28 }
 0x202   : > { %v1521_v57 = vadd.f32 %v1520_v19, %v1456_v8 }
 0x203   : > { %v2220_v33 = vpop.f32.mrf.mxu2 }
 0x204   : > { %v2282_v41 = vpop.f32.mrf.mxu0  ;;  %v2221_v61 = vadd.f32 %v2220_v33, %v2156_v51  ;;  %v1586_v25 = vadd.f32 %v4312_v5, %v1521_v57 }
 0x205   : > { %v4461_v38 = vpop.f32.mrf.mxu3  ;;  %v2283_v24 = vadd.f32 %v2282_v41, %v2218_v17 }
 0x206   : > { %v2738_v55 = vmul.f32 -1.442695, %v1586_v25  ;;  %v3037_v17 = vpop.eup %3036 }
 0x207   : > { %v2766_v47 = vmul.f32 -1.442695, %v2283_v24  ;;  %v3039_v5 = vpop.eup %3038  ;;  %v4469_v21 = vadd.f32 1.0, %v3037_v17  ;;  %v4511_v17 = vadd.f32 %v4387_v49, %v4438_v43 }
 0x208   : > { %3040 = vpow2.f32 %v2738_v55  ;;  %v4471_v7 = vadd.f32 1.0, %v3039_v5 }
 0x209   : > { %v1523_v1 = vpop.f32.mrf.mxu1  ;;  %3042 = vpow2.f32 %v2766_v47  ;;  %vm1683_vm13 = vweird.f32 %v4469_v21 }
 0x20a   : > { %v1524_v19 = vadd.f32 %v1523_v1, %v1459_v35  ;;  %3044 = vrcp.f32 %v4469_v21  ;;  %vm2380_vm14 = vweird.f32 %v4471_v7 }
 0x20b   : > { %v2223_v18 = vpop.f32.mrf.mxu2  ;;  %3046 = vrcp.f32 %v4471_v7 }
 0x20c   : > { %v2285_v20 = vpop.f32.mrf.mxu0  ;;  %v2224_v33 = vadd.f32 %v2223_v18, %v2159_v30  ;;  %v1589_v57 = vadd.f32 %v4329_v58, %v1524_v19  ;;  %v1465_v58 = vadd.f32 %v4393_v23, %v4389_v37  ;;  %v4490_v18 = vadd.f32 %v4322_v48, %v4415_v0 }
 0x20d   : > { %v4466_v32 = vpop.f32.mrf.mxu3  ;;  %v2286_v60 = vadd.f32 %v2285_v20, %v2221_v61  ;;  %v4503_v48 = vadd.f32 %v4357_v4, %v4408_v10  ;;  %v4507_v0 = vadd.f32 %v4371_v63, %v4430_v36  ;;  %v4519_v4 = vadd.f32 %v4404_v27, %v4424_v40  ;;  %v2032_v36 = vpop.permute.xlu2 %2031 }
 0x20e   : > { %v3041_v51 = vpop.eup %3040  ;;  %v2739_v53 = vmul.f32 -1.442695, %v1589_v57  ;;  %v4523_v63 = vadd.f32 %v4434_v39, %v4406_v6  ;;  %v1689_v10 = vand.u32 2147483648, %v4469_v21  ;;  %v4542_v39 = vadd.f32 %v4444_v52, %v4452_v3 }
 0x20f   : > { %v3043_v28 = vpop.eup %3042  ;;  %v4480_v25 = vadd.f32 1.0, %v3041_v51  ;;  %v2767_v55 = vmul.f32 -1.442695, %v2286_v60  ;;  %v4499_v60 = vadd.f32 %v4338_v31, %v4428_v16  ;;  %v2037_v51 = vpop.permute.xlu0 %2036  ;;  %v2384_v3 = vand.u32 2147483647, %v4471_v7 }
 0x210   : > { %v4482_v35 = vadd.f32 1.0, %v3043_v28  ;;  %3048 = vpow2.f32 %v2739_v53  ;;  %v4486_v47 = vpop.eup %3044  ;;  %v4551_v52 = vor.u32 1.1754944e-38, %v1689_v10 }
 0x211   : > { %v1526_v56 = vpop.f32.mrf.mxu1  ;;  %3050 = vrcp.f32 %v4480_v25  ;;  %v4493_v23 = vpop.eup %3046  ;;  %v1679_v31 = vmul.f32 %v4486_v47, %v4469_v21  ;;  %vm1684_vm15 = vweird.f32 %v4486_v47  ;;  %vm4581_vm2 = vcmp.eq.f32.partialorder %v2384_v3, 8.507059e+37 }
 0x212   : > { %v1527_v8 = vadd.f32 %v1526_v56, %v4350_v14  ;;  %v2162_v14 = vadd.f32 %v4448_v9, %v2027_v26  ;;  %3052 = vrcp.f32 %v4482_v35  ;;  %v2376_v49 = vmul.f32 %v4493_v23, %v4471_v7  ;;  %vm4607_vm4 = vmor %vm1683_vm13, %vm1684_vm15 }
 0x213   : > { %v2226_v50 = vpop.f32.mrf.mxu2  ;;  %3054 = vpow2.f32 %v2767_v55  ;;  %v2168_v26 = vadd.f32 %v4461_v38, %v2037_v51  ;;  %vm2381_vm0 = vweird.f32 %v4493_v23  ;;  %vm1698_vm3 = vweird.f32 %v4480_v25 }
 0x214   : > { %v2288_v41 = vpop.f32.mrf.mxu0  ;;  %v1592_v30 = vadd.f32 %v4347_v12, %v1527_v8  ;;  %v2227_v9 = vadd.f32 %v2226_v50, %v2162_v14  ;;  %v2386_v8 = vand.u32 2147483648, %v4471_v7  ;;  %v2377_v50 = vsub.f32 1.0, %v2376_v49  ;;  %vm4623_vm5 = vmor %vm2380_vm14, %vm2381_vm0 }
 0x215   : > { %v2289_v61 = vadd.f32 %v2288_v41, %v2224_v33  ;;  %v4476_v24 = vpop.f32.mrf.mxu3  ;;  %v1687_v41 = vand.u32 2147483647, %v4469_v21  ;;  %vm2395_vm8 = vweird.f32 %v4482_v35 }
 0x216   : > { %v2740_v20 = vmul.f32 -1.442695, %v1592_v30  ;;  %v3049_v5 = vpop.eup %3048 }
 0x217   : > { %v4538_v6 = vpop.eup %3050  ;;  %v4544_v43 = vadd.f32 1.0, %v3049_v5  ;;  %vm4577_vm1 = vcmp.eq.f32.partialorder %v1687_v41, 8.507059e+37 }
 0x218   : > { %3056 = vpow2.f32 %v2740_v20  ;;  %v4547_v57 = vpop.eup %3052  ;;  %vm1699_vm7 = vweird.f32 %v4538_v6 }
 0x219   : > { %v1529_v1 = vpop.f32.mrf.mxu1  ;;  %v3055_v28 = vpop.eup %3054  ;;  %vm2396_vm9 = vweird.f32 %v4547_v57  ;;  %vm4665_vm10 = vmor %vm1698_vm3, %vm1699_vm7  ;;  %vm1713_vm13 = vweird.f32 %v4544_v43 }
 0x21a   : > { %v1530_v19 = vadd.f32 %v1529_v1, %v1465_v58  ;;  %v2042_v58 = vpop.permute.xlu1 %2041  ;;  %v2391_v1 = vmul.f32 %v4547_v57, %v4482_v35  ;;  %vm4693_vm12 = vmor %vm2395_vm8, %vm2396_vm9 }
 0x21b   : > { %v2229_v37 = vpop.f32.mrf.mxu2  ;;  %v4563_v55 = vadd.f32 %v4466_v32, %v2042_v58 }
 0x21c   : > { %v1595_v12 = vadd.f32 %v4362_v45, %v1530_v19  ;;  %v2291_v33 = vpop.f32.mrf.mxu0  ;;  %v1468_v45 = vadd.f32 %v4413_v15, %v4395_v42  ;;  %v4530_v42 = vadd.f32 %v4426_v59, %v4442_v22  ;;  %v4534_v15 = vadd.f32 %v4446_v2, %v4391_v46 }
 0x21d   : > { %v2292_v27 = vadd.f32 %v2291_v33, %v2227_v9  ;;  %v4536_v40 = vpop.f32.mrf.mxu3  ;;  %v2165_v59 = vadd.f32 %v4456_v62, %v2032_v36  ;;  %v1680_v46 = vsub.f32 1.0, %v1679_v31  ;;  %v2768_v2 = vmul.f32 -1.442695, %v2289_v61 }
 0x21e   : > { %v2741_v16 = vmul.f32 -1.442695, %v1595_v12  ;;  %v1694_v62 = vmul.f32 %v4538_v6, %v4480_v25  ;;  %v3057_v20 = vpop.eup %3056  ;;  %v4569_v33 = vadd.f32 1.0, %v3055_v28  ;;  %v2392_v31 = vsub.f32 1.0, %v2391_v1 }
 0x21f   : > { %v2769_v61 = vmul.f32 -1.442695, %v2292_v27  ;;  %v2230_v19 = vadd.f32 %v2229_v37, %v2165_v59  ;;  %v1681_v9 = vmul.f32 %v4486_v47, %v1680_v46  ;;  %v1704_v37 = vand.u32 2147483648, %v4480_v25 }
 0x220   : > { %3058 = vpow2.f32 %v2741_v16  ;;  %v1695_v32 = vsub.f32 1.0, %v1694_v62  ;;  %v4575_v16 = vadd.f32 1.0, %v3057_v20  ;;  %v1702_v59 = vand.u32 2147483647, %v4480_v25 }
 0x221   : > { %v1532_v22 = vpop.f32.mrf.mxu1  ;;  %3060 = vrcp.f32 %v4544_v43 }
 0x222   : > { %v1533_v56 = vadd.f32 %v1532_v22, %v1468_v45  ;;  %3062 = vpow2.f32 %v2768_v2  ;;  %v2378_v45 = vmul.f32 %v4493_v23, %v2377_v50  ;;  %5483 = vst [vmem:[#allocation4_spill] sm:$0xff] %v4575_v16  ;;  %v2047_v50 = vpop.permute.xlu2 %2046  ;;  %v1696_v58 = vmul.f32 %v4538_v6, %v1695_v32 }
 0x223   : > { %v2232_v53 = vpop.f32.mrf.mxu2  ;;  %3064 = vpow2.f32 %v2769_v61  ;;  %v4598_v28 = vadd.f32 %v4476_v24, %v2047_v50  ;;  %v2393_v24 = vmul.f32 %v4547_v57, %v2392_v31  ;;  %vm4627_vm6 = vcmp.eq.f32.partialorder %v1702_v59, 8.507059e+37 }
 0x224   : > { %v1598_v14 = vadd.f32 %v4378_v29, %v1533_v56  ;;  %v2294_v30 = vpop.f32.mrf.mxu0  ;;  %v4567_v29 = vor.u32 1.1754944e-38, %v2386_v8  ;;  %v2233_v49 = vadd.f32 %v2232_v53, %v2168_v26  ;;  %v1682_v56 = vadd.f32 %v4486_v47, %v1681_v9 }
 0x225   : > { %v2295_v5 = vadd.f32 %v2294_v30, %v2230_v19  ;;  %v4588_v46 = vpop.f32.mrf.mxu3  ;;  %v2379_v41 = vadd.f32 %v4493_v23, %v2378_v45  ;;  %v1705_v26 = vor.u32 1.1754944e-38, %v1704_v37  ;;  %v2399_v30 = vand.u32 2147483647, %v4482_v35 }
 0x226   : > { %v2742_v38 = vmul.f32 -1.442695, %v1598_v14  ;;  %v3059_v12 = vpop.eup %3058  ;;  %v1686_v20 = vsel %vm4607_vm4, %v4486_v47, %v1682_v56  ;;  %v1697_v7 = vadd.f32 %v4538_v6, %v1696_v58  ;;  %v2394_v31 = vadd.f32 %v4547_v57, %v2393_v24  ;;  %v2052_v56 = vpop.permute.xlu0 %2051 }
 0x227   : > { %v4586_v22 = vadd.f32 1.0, %v3059_v12  ;;  %v4592_v8 = vpop.eup %3060  ;;  %v2770_v51 = vmul.f32 -1.442695, %v2295_v5  ;;  %v2383_v47 = vsel %vm4623_vm5, %v4493_v23, %v2379_v41  ;;  %vm4669_vm11 = vcmp.eq.f32.partialorder %v2399_v30, 8.507059e+37 }
 0x228   : > { %3066 = vpow2.f32 %v2742_v38  ;;  %v3063_v3 = vpop.eup %3062  ;;  %v1709_v1 = vmul.f32 %v4592_v8, %v4544_v43  ;;  %v4654_v59 = vsel %vm4581_vm2, %v4567_v29, %v2383_v47  ;;  %v1719_v29 = vand.u32 2147483648, %v4544_v43 }
 0x229   : > { %v1535_v10 = vpop.f32.mrf.mxu1  ;;  %3068 = vrcp.f32 %v4569_v33  ;;  %v4631_v9 = vadd.f32 1.0, %v3063_v3  ;;  %v4681_v3 = vadd.f32 %v4536_v40, %v2052_v56  ;;  %v1701_v58 = vsel %vm4665_vm10, %v4538_v6, %v1697_v7 }
 0x22a   : > { %v1536_v2 = vadd.f32 %v1535_v10, %v4523_v63  ;;  %3070 = vrcp.f32 %v4575_v16  ;;  %v1710_v23 = vsub.f32 1.0, %v1709_v1  ;;  %v4649_v10 = vsel %vm4577_vm1, %v4551_v52, %v1686_v20 }
 0x22b   : > { %v2235_v53 = vpop.f32.mrf.mxu2  ;;  %3072 = vrcp.f32 %v4586_v22  ;;  %5494 = vst [vmem:[#allocation5_spill] sm:$0xff] %v4631_v9  ;;  %v1717_v24 = vand.u32 2147483647, %v4544_v43  ;;  %vm1714_vm14 = vweird.f32 %v4592_v8  ;;  %vm2410_vm1 = vweird.f32 %v4569_v33 }
 0x22c   : > { %v1601_v62 = vadd.f32 %v4400_v44, %v1536_v2  ;;  %v2297_v63 = vpop.f32.mrf.mxu0  ;;  %v3065_v44 = vpop.eup %3064  ;;  %3074 = vpow2.f32 %v2770_v51  ;;  %v2236_v6 = vadd.f32 %v2235_v53, %v4563_v55  ;;  %vm1743_vm2 = vweird.f32 %v4586_v22  ;;  %vm4772_vm3 = vmor %vm1713_vm13, %vm1714_vm14 }
 0x22d   : > { %v2298_v61 = vadd.f32 %v2297_v63, %v2233_v49  ;;  %v4641_v32 = vadd.f32 1.0, %v3065_v44  ;;  %v2401_v49 = vand.u32 2147483648, %v4482_v35  ;;  %v4683_v25 = vpop.f32.mrf.mxu3  ;;  %v1711_v35 = vmul.f32 %v4592_v8, %v1710_v23  ;;  %v2057_v53 = vpop.permute.xlu1 %2056 }
 0x22e   : > { %v2743_v19 = vmul.f32 -1.442695, %v1601_v62  ;;  %v3067_v5 = vpop.eup %3066  ;;  %vm4736_vm15 = vcmp.eq.f32.partialorder %v1717_v24, 8.507059e+37 }
 0x22f   : > { %v2771_v12 = vmul.f32 -1.442695, %v2298_v61  ;;  %v4639_v45 = vpop.eup %3068  ;;  %v4659_v50 = vadd.f32 1.0, %v3067_v5  ;;  %v2402_v40 = vor.u32 1.1754944e-38, %v2401_v49  ;;  %v4731_v5 = vadd.f32 %v4588_v46, %v2057_v53 }
 0x230   : > { %3076 = vpow2.f32 %v2743_v19  ;;  %v4656_v2 = vpop.eup %3070  ;;  %v4678_v41 = vmul.f32 %v4639_v45, %v4569_v33  ;;  %v4716_v19 = vor.u32 1.1754944e-38, %v1719_v29  ;;  %v1712_v49 = vadd.f32 %v4592_v8, %v1711_v35 }
 0x231   : > { %v1538_v37 = vpop.f32.mrf.mxu1  ;;  %3078 = vpow2.f32 %v2771_v12  ;;  %v4674_v27 = vpop.eup %3072  ;;  %v4709_v1 = vmul.f32 %v4656_v2, %v4575_v16  ;;  %vm2411_vm0 = vweird.f32 %v4639_v45  ;;  %v1747_v35 = vand.u32 2147483647, %v4586_v22 }
 0x232   : > { %3080 = vrcp.f32 %v4631_v9  ;;  %v1539_v62 = vadd.f32 %v1538_v37, %v4534_v15  ;;  %v3075_v14 = vpop.eup %3074  ;;  %v2398_v15 = vsel %vm4693_vm12, %v4547_v57, %v2394_v31  ;;  %v4714_v57 = vsel %vm4627_vm6, %v1705_v26, %v1701_v58  ;;  %vm4828_vm9 = vmor %vm2410_vm1, %vm2411_vm0 }
 0x233   : > { %v2238_v51 = vpop.f32.mrf.mxu2  ;;  %3082 = vrcp.f32 %v4641_v32  ;;  %v4719_v20 = vadd.f32 1.0, %v3075_v14  ;;  %v4723_v12 = vsel %vm4669_vm11, %v2402_v40, %v2398_v15  ;;  %v1739_v38 = vmul.f32 %v4674_v27, %v4586_v22 }
 0x234   : > { %v2300_v63 = vpop.f32.mrf.mxu0  ;;  %v1604_v44 = vadd.f32 %v4419_v13, %v1539_v62  ;;  %3084 = vrcp.f32 %v4659_v50  ;;  %v2407_v13 = vsub.f32 1.0, %v4678_v41  ;;  %5501 = vst [vmem:[#allocation6_spill] sm:$0xff] %v4723_v12  ;;  %v1749_v26 = vand.u32 2147483648, %v4586_v22 }
 0x235   : > { %v2301_v21 = vadd.f32 %v2300_v63, %v2236_v6  ;;  %v2239_v41 = vadd.f32 %v2238_v51, %v4598_v28  ;;  %3086 = vrcp.f32 %v4719_v20  ;;  %v1740_v40 = vsub.f32 1.0, %v1739_v38  ;;  %v2185_v6 = vpop.f32.mrf.mxu3 }
 0x236   : > { %v3077_v30 = vpop.eup %3076  ;;  %v2744_v31 = vmul.f32 -1.442695, %v1604_v44  ;;  %v4757_v24 = vor.u32 1.1754944e-38, %v1749_v26  ;;  %v2408_v53 = vmul.f32 %v4639_v45, %v2407_v13  ;;  %v1716_v38 = vsel %vm4772_vm3, %v4592_v8, %v1712_v49 }
 0x237   : > { %v3079_v55 = vpop.eup %3078  ;;  %v4733_v7 = vadd.f32 1.0, %v3077_v30  ;;  %v2772_v58 = vmul.f32 -1.442695, %v2301_v21  ;;  %v2446_v30 = vand.u32 2147483648, %v4641_v32  ;;  %v1741_v26 = vmul.f32 %v4674_v27, %v1740_v40 }
 0x238   : > { %v4725_v47 = vpop.eup %3080  ;;  %v4745_v46 = vadd.f32 1.0, %v3079_v55  ;;  %v2461_v43 = vand.u32 2147483648, %v4719_v20  ;;  %v2444_v40 = vand.u32 2147483647, %v4641_v32  ;;  %vm1744_vm4 = vweird.f32 %v4674_v27 }
 0x239   : > { %5502 = vst [vmem:[#allocation12_spill] sm:$0xff] %v4725_v47  ;;  %v1541_v37 = vpop.f32.mrf.mxu1  ;;  %v4742_v36 = vpop.eup %3082  ;;  %v4751_v63 = vmul.f32 %v4725_v47, %v4631_v9  ;;  %3088 = vrcp.f32 %v4733_v7  ;;  %vm2440_vm5 = vweird.f32 %v4641_v32  ;;  %vm4808_vm6 = vcmp.eq.f32.partialorder %v1747_v35, 8.507059e+37  ;;  %vm4844_vm10 = vmor %vm1743_vm2, %vm1744_vm4 }
 0x23a   : > { %v1542_v61 = vadd.f32 %v1541_v37, %v4490_v18  ;;  %v4755_v15 = vpop.eup %3084  ;;  %v2436_v51 = vmul.f32 %v4742_v36, %v4641_v32  ;;  %3090 = vpow2.f32 %v2744_v31  ;;  %v1764_v37 = vand.u32 2147483648, %v4659_v50 }
 0x23b   : > { %v2241_v62 = vpop.f32.mrf.mxu2  ;;  %5505 = vst [vmem:[#allocation13_spill] sm:$0xff] %v4751_v63  ;;  %3092 = vrcp.f32 %v4745_v46  ;;  %vm2441_vm7 = vweird.f32 %v4742_v36  ;;  %vm1758_vm8 = vweird.f32 %v4659_v50  ;;  %vm4855_vm11 = vcmp.eq.f32.partialorder %v2444_v40, 8.507059e+37  ;;  %v1862_v63 = vld [vmem:[%s4873_s13] sm:$0xff] }
 0x23c   : > { %v2303_v14 = vpop.f32.mrf.mxu0  ;;  %v1607_v18 = vadd.f32 %v4436_v54, %v1542_v61  ;;  %v1754_v54 = vmul.f32 %v4755_v15, %v4659_v50  ;;  %3094 = vpow2.f32 %v2772_v58  ;;  %v2437_v61 = vsub.f32 1.0, %v2436_v51  ;;  %v2062_v58 = vpop.permute.xlu2 %2061 }
 0x23d   : > { %v2304_v28 = vadd.f32 %v2303_v14, %v2239_v41  ;;  %v4785_v41 = vpop.eup %3086  ;;  %v4788_v14 = vor.u32 1.1754944e-38, %v2446_v30  ;;  %v4793_v8 = vadd.f32 %v4683_v25, %v2062_v58  ;;  %v2242_v25 = vadd.f32 %v2241_v62, %v4681_v3 }
 0x23e   : > { %v2745_v21 = vmul.f32 -1.442695, %v1607_v18  ;;  %v4799_v18 = vsel %vm4736_vm15, %v4716_v19, %v1716_v38  ;;  %v1755_v30 = vsub.f32 1.0, %v1754_v54  ;;  %v4815_v23 = vor.u32 1.1754944e-38, %v1764_v37  ;;  %vm4894_vm15 = vmor %vm2440_vm5, %vm2441_vm7 }
 0x23f   : > { %v2773_v44 = vmul.f32 -1.442695, %v2304_v28  ;;  %v4790_v28 = vpop.eup %3088  ;;  %5508 = vst [vmem:[#allocation14_spill] sm:$0xff] %v4799_v18  ;;  %v1742_v38 = vadd.f32 %v4674_v27, %v1741_v26  ;;  %v2438_v3 = vmul.f32 %v4742_v36, %v2437_v61  ;;  %vm1759_vm13 = vweird.f32 %v4755_v15 }
 0x240   : > { %v3091_v51 = vpop.eup %3090  ;;  %v1769_v22 = vmul.f32 %v4790_v28, %v4733_v7  ;;  %vm2456_vm14 = vweird.f32 %v4785_v41  ;;  %vm2455_vm0 = vweird.f32 %v4719_v20  ;;  %vm4912_vm1 = vmor %vm1758_vm8, %vm1759_vm13  ;;  %vm1774_vm2 = vweird.f32 %v4790_v28 }
 0x241   : > { %3096 = vpow2.f32 %v2773_v44  ;;  %v1544_v31 = vpop.f32.mrf.mxu1  ;;  %v4802_v44 = vadd.f32 %v4639_v45, %v2408_v53  ;;  %v4812_v19 = vpop.eup %3092  ;;  %v4817_v53 = vor.u32 1.1754944e-38, %v2461_v43  ;;  %v1779_v43 = vand.u32 2147483648, %v4733_v7  ;;  %vm4984_vm4 = vmor %vm2455_vm0, %vm2456_vm14 }
 0x242   : > { %3098 = vpow2.f32 %v2745_v21  ;;  %v1545_v55 = vadd.f32 %v1544_v31, %v4499_v60  ;;  %v3095_v54 = vpop.eup %3094  ;;  %v2067_v60 = vpop.permute.xlu0 %2066  ;;  %v1762_v31 = vand.u32 2147483647, %v4659_v50  ;;  %vm1773_vm5 = vweird.f32 %v4733_v7 }
 0x243   : > { %v2244_v49 = vpop.f32.mrf.mxu2  ;;  %v4833_v61 = vadd.f32 %v2185_v6, %v2067_v60  ;;  %v1756_v6 = vmul.f32 %v4755_v15, %v1755_v30  ;;  %v4851_v60 = vadd.f32 1.0, %v3091_v51  ;;  %v1746_v30 = vsel %vm4844_vm10, %v4674_v27, %v1742_v38 }
 0x244   : > { %v2306_v21 = vpop.f32.mrf.mxu0  ;;  %v1610_v62 = vadd.f32 %v4297_v34, %v1545_v55  ;;  %v2188_v34 = vpop.f32.mrf.mxu3  ;;  %v2466_v51 = vmul.f32 %v4812_v19, %v4745_v46  ;;  %vm4876_vm12 = vcmp.eq.f32.partialorder %v1762_v31, 8.507059e+37  ;;  %v2476_v27 = vand.u32 2147483648, %v4745_v46 }
 0x245   : > { %v2307_v35 = vadd.f32 %v2306_v21, %v2242_v25  ;;  %v2451_v21 = vmul.f32 %v4785_v41, %v4719_v20  ;;  %v4882_v38 = vadd.f32 1.0, %v3095_v54  ;;  %v1757_v31 = vadd.f32 %v4755_v15, %v1756_v6 }
 0x246   : > { %v2746_v13 = vmul.f32 -1.442695, %v1610_v62  ;;  %v1770_v54 = vsub.f32 1.0, %v1769_v22  ;;  %v2467_v6 = vsub.f32 1.0, %v2466_v51  ;;  %v1794_v18 = vand.u32 2147483648, %v4851_v60 }
 0x247   : > { %v3097_v26 = vpop.eup %3096  ;;  %v2774_v40 = vmul.f32 -1.442695, %v2307_v35  ;;  %5519 = vst [vmem:[#allocation15_spill] sm:$0xff] %v4882_v38  ;;  %v2452_v35 = vsub.f32 1.0, %v2451_v21  ;;  %v2245_v21 = vadd.f32 %v2244_v49, %v4731_v5  ;;  %v1761_v50 = vsel %vm4912_vm1, %v4755_v15, %v1757_v31  ;;  %v1863_v5 = vld [vmem:[%s4873_s13 + $0x10] sm:$0xff] }
 0x248   : > { %v3099_v25 = vpop.eup %3098  ;;  %v4853_v29 = vadd.f32 1.0, %v3097_v26  ;;  %v2439_v26 = vadd.f32 %v4742_v36, %v2438_v3  ;;  %v4942_v15 = vor.u32 1.1754944e-38, %v1794_v18 }
 0x249   : > { %v4861_v56 = vadd.f32 1.0, %v3099_v25  ;;  %v1547_v9 = vpop.f32.mrf.mxu1  ;;  %v4886_v25 = vor.u32 1.1754944e-38, %v1779_v43  ;;  %v1751_v43 = vsel %vm4808_vm6, %v4757_v24, %v1746_v30  ;;  %v2072_v24 = vpop.permute.xlu1 %2071 }
 0x24a   : > { %3100 = vrcp.f32 %v4853_v29  ;;  %v2443_v32 = vsel %vm4894_vm15, %v4742_v36, %v2439_v26  ;;  %v1548_v49 = vadd.f32 %v1547_v9, %v4503_v48  ;;  %v2453_v36 = vmul.f32 %v4785_v41, %v2452_v35  ;;  %5525 = vst [vmem:[#allocation17_spill] sm:$0xff] %v4942_v15 }
 0x24b   : > { %3102 = vrcp.f32 %v4861_v56  ;;  %v2247_v47 = vpop.f32.mrf.mxu2  ;;  %v4923_v30 = vadd.f32 %v2188_v34, %v2072_v24  ;;  %v4925_v51 = vmul.f32 %v1862_v63, %v1751_v43  ;;  %v1771_v26 = vmul.f32 %v4790_v28, %v1770_v54 }
 0x24c   : > { %3104 = vrcp.f32 %v4851_v60  ;;  %v2309_v3 = vpop.f32.mrf.mxu0  ;;  %v2448_v35 = vsel %vm4855_vm11, %v4788_v14, %v2443_v32  ;;  %v4940_v63 = vmul.f32 %v4812_v19, %v2467_v6  ;;  %v2191_v31 = vpop.f32.mrf.mxu3  ;;  %v2248_v52 = vadd.f32 %v2247_v47, %v4793_v8 }
 0x24d   : > { %3106 = vpow2.f32 %v2746_v13  ;;  %v4916_v13 = vor.u32 1.1754944e-38, %v2476_v27  ;;  %v2310_v58 = vadd.f32 %v2309_v3, %v2245_v21  ;;  %v1613_v27 = vadd.f32 %v4310_v11, %v1548_v49  ;;  %v2077_v8 = vpop.permute.xlu2 %2076 }
 0x24e   : > { %3108 = vpow2.f32 %v2774_v40  ;;  %v2491_v3 = vand.u32 2147483648, %v4882_v38  ;;  %v1766_v14 = vsel %vm4876_vm12, %v4815_v23, %v1761_v50  ;;  %v4959_v24 = vadd.f32 %v4785_v41, %v2453_v36  ;;  %v5526_v23 = vld [vmem:[#allocation7_spill] sm:$0xff]  ;;  %vm5056_vm12 = vmor %vm1773_vm5, %vm1774_vm2 }
 0x24f   : > { %5524 = vst [vmem:[#allocation16_spill] sm:$0xff] %v4916_v13  ;;  %3110 = vrcp.f32 %v4882_v38  ;;  %v2775_v48 = vmul.f32 -1.442695, %v2310_v58  ;;  %v2747_v54 = vmul.f32 -1.442695, %v1613_v27  ;;  %v4972_v36 = vadd.f32 %v2191_v31, %v2077_v8 }
 0x250   : > { %v4920_v22 = vpop.eup %3100  ;;  %v4969_v27 = vor.u32 1.1754944e-38, %v2491_v3  ;;  %v1809_v3 = vand.u32 2147483648, %v4861_v56  ;;  %vm2500_vm6 = vweird.f32 %v4853_v29  ;;  %v2504_v15 = vand.u32 2147483647, %v4853_v29 }
 0x251   : > { %v4930_v40 = vpop.eup %3102  ;;  %v1550_v9 = vpop.f32.mrf.mxu1  ;;  %3112 = vpow2.f32 %v2775_v48  ;;  %v2496_v18 = vmul.f32 %v4920_v22, %v4853_v29  ;;  %v5528_v48 = vand.u32 2147483647, %v4719_v20  ;;  %v2458_v20 = vsel %vm4984_vm4, %v4785_v41, %v4959_v24 }
 0x252   : > { %v4937_v34 = vpop.eup %3104  ;;  %v1551_v11 = vadd.f32 %v1550_v9, %v4507_v0  ;;  %v1799_v43 = vmul.f32 %v4930_v40, %v4861_v56  ;;  %v2777_v0 = vld [vmem:[%s4873_s13 + $0x8] sm:$0xff]  ;;  %3114 = vpow2.f32 %v2747_v54  ;;  %5527 = vst [vmem:[#allocation7_spill] sm:$0xff] %v4969_v27  ;;  %v4992_v54 = vmul.f32 %v1863_v5, %v1766_v14 }
 0x253   : > { %v3107_v55 = vpop.eup %3106  ;;  %v1784_v50 = vmul.f32 %v4937_v34, %v4851_v60  ;;  %vm4976_vm3 = vcmp.eq.f32.partialorder %v5528_v48, 8.507059e+37  ;;  %v2250_v31 = vpop.f32.mrf.mxu2  ;;  %v1807_v27 = vand.u32 2147483647, %v4861_v56  ;;  %vm1803_vm7 = vweird.f32 %v4861_v56 }
 0x254   : > { %v3109_v21 = vpop.eup %3108  ;;  %v4954_v6 = vadd.f32 1.0, %v3107_v55  ;;  %v2312_v32 = vpop.f32.mrf.mxu0  ;;  %v1616_v49 = vadd.f32 %v5526_v23, %v1551_v11  ;;  %v4990_v55 = vmul.f32 %v2777_v0, %v2448_v35  ;;  %v1800_v35 = vsub.f32 1.0, %v1799_v43 }
 0x255   : > { %v4961_v47 = vpop.eup %3110  ;;  %v4963_v62 = vadd.f32 1.0, %v3109_v21  ;;  %v2313_v58 = vadd.f32 %v2312_v32, %v2248_v52  ;;  %v5002_v21 = vadd.f32 %v4790_v28, %v1771_v26  ;;  %v1777_v32 = vand.u32 2147483647, %v4733_v7 }
 0x256   : > { %3116 = vrcp.f32 %v4954_v6  ;;  %v2481_v52 = vmul.f32 %v4961_v47, %v4882_v38  ;;  %v2497_v0 = vsub.f32 1.0, %v2496_v18  ;;  %v2748_v14 = vmul.f32 -1.442695, %v1616_v49 }
 0x257   : > { %3118 = vrcp.f32 %v4963_v62  ;;  %v3113_v8 = vpop.eup %3112  ;;  %v2776_v5 = vmul.f32 -1.442695, %v2313_v58  ;;  %v1785_v48 = vsub.f32 1.0, %v1784_v50  ;;  %v5009_v41 = vor.u32 1.1754944e-38, %v1809_v3  ;;  %v2194_v58 = vpop.f32.mrf.mxu3 }
 0x258   : > { %v3115_v11 = vpop.eup %3114  ;;  %v2506_v26 = vand.u32 2147483648, %v4853_v29  ;;  %v5012_v24 = vadd.f32 1.0, %v3113_v8  ;;  %3120 = vpow2.f32 %v2748_v14  ;;  %v2482_v18 = vsub.f32 1.0, %v2481_v52  ;;  %v2082_v52 = vpop.permute.xlu0 %2081 }
 0x259   : > { %v1553_v23 = vpop.f32.mrf.mxu1  ;;  %v5016_v49 = vadd.f32 1.0, %v3115_v11  ;;  %3122 = vpow2.f32 %v2776_v5  ;;  %v1801_v3 = vmul.f32 %v4930_v40, %v1800_v35  ;;  %v2498_v12 = vmul.f32 %v4920_v22, %v2497_v0 }
 0x25a   : > { %v1554_v50 = vadd.f32 %v1553_v23, %v4511_v17  ;;  %3124 = vrcp.f32 %v5012_v24  ;;  %v5027_v14 = vmul.f32 %v4937_v34, %v1785_v48  ;;  %v2251_v5 = vadd.f32 %v2250_v31, %v4833_v61  ;;  %v5539_v61 = vld [vmem:[#allocation8_spill] sm:$0xff] }
 0x25b   : > { %3126 = vrcp.f32 %v5016_v49  ;;  %vm5033_vm8 = vcmp.eq.f32.partialorder %v1807_v27, 8.507059e+37  ;;  %vm5037_vm10 = vcmp.eq.f32.partialorder %v2504_v15, 8.507059e+37  ;;  %v2507_v23 = vor.u32 1.1754944e-38, %v2506_v26 }
 0x25c   : > { %v5014_v43 = vpop.eup %3116  ;;  %v2315_v16 = vpop.f32.mrf.mxu0  ;;  %5533 = vst [vmem:[#allocation18_spill] sm:$0xff] %v5027_v14  ;;  %v5041_v11 = vadd.f32 %v2194_v58, %v2082_v52  ;;  %v2463_v48 = vsel %vm4976_vm3, %v4817_v53, %v2458_v20  ;;  %v2778_v14 = vld [vmem:[%s4873_s13 + $0x18] sm:$0xff]  ;;  %v5048_v38 = vmul.f32 %v4961_v47, %v2482_v18  ;;  %vm2501_vm11 = vweird.f32 %v4920_v22 }
 0x25d   : > { %v5019_v13 = vpop.eup %3118  ;;  %v1814_v8 = vmul.f32 %v5014_v43, %v4954_v6  ;;  %v1619_v27 = vadd.f32 %v5539_v61, %v1554_v50  ;;  %v2316_v31 = vadd.f32 %v2315_v16, %v2251_v5  ;;  %v1802_v53 = vadd.f32 %v4930_v40, %v1801_v3  ;;  %v2253_v18 = vpop.f32.mrf.mxu2  ;;  %vm5075_vm14 = vmor %vm2500_vm6, %vm2501_vm11 }
 0x25e   : > { %v2511_v17 = vmul.f32 %v5019_v13, %v4963_v62  ;;  %5538 = vst [vmem:[#allocation19_spill] sm:$0xff] %v5048_v38  ;;  %v3121_v15 = vpop.eup %3120  ;;  %vm1804_vm13 = vweird.f32 %v4930_v40  ;;  %v2499_v9 = vadd.f32 %v4920_v22, %v2498_v12  ;;  %v5063_v52 = vmul.f32 %v2778_v14, %v2463_v48 }
 0x25f   : > { %v1815_v20 = vsub.f32 1.0, %v1814_v8  ;;  %v3123_v50 = vpop.eup %3122  ;;  %3128 = vtanh.f32 %v1619_v27  ;;  %v1776_v7 = vsel %vm5056_vm12, %v4790_v28, %v5002_v21  ;;  %v1824_v3 = vand.u32 2147483648, %v4954_v6  ;;  %vm5092_vm0 = vmor %vm1803_vm7, %vm1804_vm13 }
 0x260   : > { %v2512_v16 = vsub.f32 1.0, %v2511_v17  ;;  %v5069_v5 = vpop.eup %3124  ;;  %v5080_v8 = vadd.f32 1.0, %v3121_v15  ;;  %3130 = vtanh.f32 %v2316_v31  ;;  %vm5082_vm15 = vcmp.eq.f32.partialorder %v1777_v32, 8.507059e+37 }
 0x261   : > { %v1556_v58 = vpop.f32.mrf.mxu1  ;;  %v5086_v28 = vpop.eup %3126  ;;  %vm1818_vm1 = vweird.f32 %v4954_v6  ;;  %v1822_v21 = vand.u32 2147483647, %v4954_v6  ;;  %v2519_v17 = vand.u32 2147483647, %v4963_v62  ;;  %v2521_v32 = vand.u32 2147483648, %v4963_v62 }
 0x262   : > { %v1806_v61 = vsel %vm5092_vm0, %v4930_v40, %v1802_v53  ;;  %v2503_v56 = vsel %vm5075_vm14, %v4920_v22, %v2499_v9  ;;  %v1816_v27 = vmul.f32 %v5014_v43, %v1815_v20  ;;  %v1829_v31 = vmul.f32 %v5086_v28, %v5016_v49 }
 0x263   : > { %v2513_v15 = vmul.f32 %v5019_v13, %v2512_v16  ;;  %vm2515_vm2 = vweird.f32 %v4963_v62  ;;  %v2526_v26 = vmul.f32 %v5069_v5, %v5012_v24  ;;  %v1557_v38 = vadd.f32 %v1556_v58, %v4519_v4 }
 0x264   : > { %v2318_v48 = vpop.f32.mrf.mxu0  ;;  %v5114_v29 = vor.u32 1.1754944e-38, %v1824_v3  ;;  %v1830_v40 = vsub.f32 1.0, %v1829_v31  ;;  %3132 = vrcp.f32 %v5080_v8  ;;  %v5117_v22 = vadd.f32 1.0, %v3123_v50  ;;  %v5552_v3 = vld [vmem:[#allocation9_spill] sm:$0xff]  ;;  %v2779_v31 = vld [vmem:[%s4873_s13 + $0x28] sm:$0xff] }
 0x265   : > { %v3129_v53 = vpop.eup %3128  ;;  %v5122_v9 = vsel %vm5033_vm8, %v5009_v41, %v1806_v61  ;;  %v5126_v20 = vsel %vm5037_vm10, %v2507_v23, %v2503_v56  ;;  %v2522_v16 = vor.u32 1.1754944e-38, %v2521_v32  ;;  %v2254_v4 = vadd.f32 %v2253_v18, %v4923_v30  ;;  %v1864_v41 = vld [vmem:[%s4873_s13 + $0x20] sm:$0xff] }
 0x266   : > { %v3131_v58 = vpop.eup %3130  ;;  %vm2471_vm3 = vweird.f32 %v4812_v19  ;;  %v1817_v50 = vadd.f32 %v5014_v43, %v1816_v27  ;;  %vm1819_vm4 = vweird.f32 %v5014_v43  ;;  %vm5132_vm5 = vcmp.eq.f32.partialorder %v1822_v21, 8.507059e+37 }
 0x267   : > { %vm2516_vm6 = vweird.f32 %v5019_v13  ;;  %vm5137_vm7 = vcmp.eq.f32.partialorder %v2519_v17, 8.507059e+37  ;;  %v1870_v30 = vmul.f32 %v3129_v53, %v4649_v10  ;;  %v2514_v0 = vadd.f32 %v5019_v13, %v2513_v15  ;;  %v2256_v10 = vpop.f32.mrf.mxu2  ;;  %vm5164_vm11 = vmor %vm1818_vm1, %vm1819_vm4 }
 0x268   : > { %v2527_v23 = vsub.f32 1.0, %v2526_v26  ;;  %v2568_v18 = vmul.f32 %v3131_v58, %v4654_v59  ;;  %v1622_v32 = vadd.f32 %v5552_v3, %v1557_v38  ;;  %vm2470_vm8 = vweird.f32 %v4745_v46  ;;  %vm5180_vm12 = vmor %vm2515_vm2, %vm2516_vm6 }
 0x269   : > { %v1559_v35 = vpop.f32.mrf.mxu1  ;;  %v1831_v21 = vmul.f32 %v5086_v28, %v1830_v40  ;;  %vm1833_vm10 = vweird.f32 %v5016_v49  ;;  %3134 = vrcp.f32 %v5117_v22  ;;  %v5158_v59 = vsel %vm5082_vm15, %v4886_v25, %v1776_v7  ;;  %vm5252_vm2 = vmor %vm2470_vm8, %vm2471_vm3 }
 0x26a   : > { %v1839_v17 = vand.u32 2147483648, %v5016_v49  ;;  %v1874_v61 = vadd.f32 %v1870_v30, %v4925_v51  ;;  %v2572_v56 = vadd.f32 %v2568_v18, %v4990_v55  ;;  %3136 = vtanh.f32 %v1622_v32  ;;  %v5171_v27 = vpop.eup %3132  ;;  %v5560_v30 = vld [vmem:[#allocation10_spill] sm:$0xff] }
 0x26b   : > { %v1821_v25 = vsel %vm5164_vm11, %v5014_v43, %v1817_v50  ;;  %v1837_v51 = vand.u32 2147483647, %v5016_v49  ;;  %v2536_v55 = vand.u32 2147483648, %v5012_v24  ;;  %v2319_v7 = vadd.f32 %v2318_v48, %v2254_v4 }
 0x26c   : > { %v5557_v14 = vand.u32 2147483647, %v4569_v33  ;;  %v2518_v43 = vsel %vm5180_vm12, %v5019_v13, %v2514_v0  ;;  %vm1834_vm14 = vweird.f32 %v5086_v28  ;;  %v2528_v62 = vmul.f32 %v5069_v5, %v2527_v23  ;;  %1890 = vst [vmem:[%s5153_s16] sm:$0xff] %v1874_v61  ;;  %v2321_v15 = vpop.f32.mrf.mxu0 }
 0x26d   : > { %3138 = vtanh.f32 %v1874_v61  ;;  %vm1789_vm15 = vweird.f32 %v4937_v34  ;;  %v5200_v48 = vadd.f32 %v5086_v28, %v1831_v21  ;;  %2785 = vst [vmem:[%s5153_s16 + $0x8] sm:$0xff] %v2572_v56  ;;  %v2257_v26 = vadd.f32 %v2256_v10, %v4972_v36  ;;  %vm5233_vm1 = vmor %vm1833_vm10, %vm1834_vm14 }
 0x26e   : > { %vm5188_vm13 = vcmp.eq.f32.partialorder %v5557_v14, 8.507059e+37  ;;  %3140 = vtanh.f32 %v2572_v56  ;;  %v1560_v40 = vadd.f32 %v1559_v35, %v4530_v42  ;;  %v5205_v53 = vor.u32 1.1754944e-38, %v1839_v17 }
 0x26f   : > { %v2534_v13 = vand.u32 2147483647, %v5012_v24  ;;  %v5210_v4 = vmul.f32 %v5171_v27, %v5080_v8  ;;  %3142 = vtanh.f32 %v2319_v7  ;;  %v5212_v58 = vpop.eup %3134  ;;  %vm1788_vm0 = vweird.f32 %v4851_v60  ;;  %v2259_v7 = vpop.f32.mrf.mxu2 }
 0x270   : > { %v5215_v50 = vor.u32 1.1754944e-38, %v2536_v55  ;;  %v1625_v36 = vadd.f32 %v5560_v30, %v1560_v40  ;;  %v2322_v0 = vadd.f32 %v2321_v15, %v2257_v26  ;;  %v2469_v42 = vadd.f32 %v4812_v19, %v4940_v63  ;;  %v3137_v35 = vpop.eup %3136  ;;  %v5568_v15 = vld [vmem:[#allocation15_spill] sm:$0xff]  ;;  %vm5310_vm8 = vmor %vm1788_vm0, %vm1789_vm15 }
 0x271   : > { %v5223_v23 = vsel %vm5132_vm5, %v5114_v29, %v1821_v25  ;;  %v5227_v18 = vsel %vm5137_vm7, %v2522_v16, %v2518_v43  ;;  %v5238_v63 = vadd.f32 %v5069_v5, %v2528_v62  ;;  %v1854_v12 = vand.u32 2147483648, %v5080_v8  ;;  %v1562_v32 = vpop.f32.mrf.mxu1 }
 0x272   : > { %v1836_v29 = vsel %vm5233_vm1, %v5086_v28, %v5200_v48  ;;  %v1871_v16 = vmul.f32 %v3137_v35, %v4714_v57  ;;  %3144 = vtanh.f32 %v1625_v36  ;;  %v2474_v21 = vand.u32 2147483647, %v4745_v46  ;;  %v5572_v36 = vld [vmem:[#allocation4_spill] sm:$0xff] }
 0x273   : > { %v3139_v10 = vpop.eup %3138  ;;  %v1845_v17 = vsub.f32 1.0, %v5210_v4  ;;  %v5259_v61 = vmul.f32 %v5212_v58, %v5117_v22  ;;  %v5565_v57 = vand.u32 2147483648, %v4569_v33  ;;  %3146 = vtanh.f32 %v2322_v0 }
 0x274   : > { %v3141_v46 = vpop.eup %3140  ;;  %vm2486_vm3 = vweird.f32 %v4961_v47  ;;  %v1882_v25 = vmul.f32 %v3139_v10, %v5122_v9  ;;  %v1875_v6 = vadd.f32 %v1871_v16, %v4992_v54  ;;  %v2473_v55 = vsel %vm5252_vm2, %v4812_v19, %v2469_v42  ;;  %v5573_v42 = vld [vmem:[#allocation18_spill] sm:$0xff]  ;;  %v2324_v16 = vpop.f32.mrf.mxu0 }
 0x275   : > { %v2417_v56 = vor.u32 1.1754944e-38, %v5565_v57  ;;  %v1563_v14 = vadd.f32 %v1562_v32, %v4542_v39  ;;  %v3143_v33 = vpop.eup %3142  ;;  %vm2531_vm4 = vweird.f32 %v5069_v5  ;;  %v2580_v43 = vmul.f32 %v3141_v46, %v5126_v20  ;;  %v5569_v20 = vld [vmem:[#allocation6_spill] sm:$0xff] }
 0x276   : > { %v1868_v62 = vmul.f32 %v1864_v41, %v5158_v59  ;;  %v5566_v54 = vsel %vm4828_vm9, %v4639_v45, %v4802_v44  ;;  %v5567_v9 = vsub.f32 1.0, %v4709_v1  ;;  %vm2485_vm5 = vweird.f32 %v5568_v15  ;;  %1886 = vst [vmem:[%s5265_s19] sm:$0xff] %v1882_v25  ;;  %v5570_v59 = vld [vmem:[#allocation11_spill] sm:$0xff]  ;;  %v5571_v45 = vld [vmem:[#allocation16_spill] sm:$0xff] }
 0x277   : > { %v2418_v19 = vsel %vm5188_vm13, %v2417_v56, %v5566_v54  ;;  %3148 = vtanh.f32 %v1875_v6  ;;  %v2569_v26 = vmul.f32 %v3143_v33, %v5569_v20  ;;  %vm2475_vm6 = vcmp.eq.f32.partialorder %v2474_v21, 8.507059e+37  ;;  %2781 = vst [vmem:[%s5265_s19 + $0x8] sm:$0xff] %v2580_v43  ;;  %v5576_v21 = vld [vmem:[#allocation14_spill] sm:$0xff] }
 0x278   : > { %v1726_v39 = vmul.f32 %v4656_v2, %v5567_v9  ;;  %v1628_v37 = vadd.f32 %v5570_v59, %v1563_v14  ;;  %vm2530_vm7 = vweird.f32 %v5012_v24  ;;  %v2478_v44 = vsel %vm2475_vm6, %v5571_v45, %v2473_v55  ;;  %v3145_v4 = vpop.eup %3144  ;;  %1891 = vst [vmem:[%s5153_s16 + $0x10] sm:$0xff] %v1875_v6  ;;  %v5583_v55 = vld [vmem:[#allocation13_spill] sm:$0xff]  ;;  %v5585_v14 = vld [vmem:[#allocation12_spill] sm:$0xff]  ;;  %vm5358_vm6 = vmor %vm2485_vm5, %vm2486_vm3 }
 0x279   : > { %v2260_v1 = vadd.f32 %v2259_v7, %v5041_v11  ;;  %vm1729_vm9 = vweird.f32 %v4656_v2  ;;  %v2573_v30 = vadd.f32 %v2569_v26, %v5063_v52  ;;  %v1734_v0 = vand.u32 2147483648, %v5572_v36  ;;  %v3147_v41 = vpop.eup %3146  ;;  %v1865_v9 = vld [vmem:[%s4873_s13 + $0x30] sm:$0xff] }
 0x27a   : > { %v1727_v40 = vadd.f32 %v4656_v2, %v1726_v39  ;;  %v1787_v35 = vadd.f32 %v4937_v34, %v5573_v42  ;;  %v1792_v32 = vand.u32 2147483647, %v4851_v60  ;;  %v1872_v10 = vmul.f32 %v3145_v4, %v5576_v21  ;;  %v5589_v26 = vld [vmem:[#allocation5_spill] sm:$0xff] }
 0x27b   : > { %vm1728_vm10 = vweird.f32 %v5572_v36  ;;  %v1732_v52 = vand.u32 2147483647, %v5572_v36  ;;  %3150 = vtanh.f32 %v1628_v37  ;;  %vm5319_vm11 = vcmp.eq.f32.partialorder %v1837_v51, 8.507059e+37  ;;  %2786 = vst [vmem:[%s5153_s16 + $0x18] sm:$0xff] %v2573_v30  ;;  %v5590_v37 = vld [vmem:[#allocation19_spill] sm:$0xff] }
 0x27c   : > { %3152 = vtanh.f32 %v2573_v30  ;;  %v2566_v60 = vmul.f32 %v2779_v31, %v2478_v44  ;;  %v2570_v57 = vmul.f32 %v3147_v41, %v2418_v19  ;;  %vm5326_vm12 = vmor %vm1728_vm10, %vm1729_vm9  ;;  %v1791_v46 = vsel %vm5310_vm8, %v4937_v34, %v1787_v35  ;;  %v2780_v41 = vld [vmem:[%s4873_s13 + $0x38] sm:$0xff] }
 0x27d   : > { %vm5335_vm13 = vcmp.eq.f32.partialorder %v2534_v13, 8.507059e+37  ;;  %v1876_v51 = vadd.f32 %v1872_v10, %v1868_v62  ;;  %v1731_v25 = vsel %vm5326_vm12, %v4656_v2, %v1727_v40  ;;  %v2325_v6 = vadd.f32 %v2324_v16, %v2260_v1  ;;  %v3149_v43 = vpop.eup %3148  ;;  %v5586_v2 = vld [vmem:[#allocation17_spill] sm:$0xff]  ;;  %vm5371_vm9 = vmor %vm2530_vm7, %vm2531_vm4 }
 0x27e   : > { %v5584_v7 = vsub.f32 1.0, %v5583_v55  ;;  %v1846_v34 = vmul.f32 %v5171_v27, %v1845_v17  ;;  %v2574_v54 = vadd.f32 %v2570_v57, %v2566_v60  ;;  %v1735_v13 = vor.u32 1.1754944e-38, %v1734_v0 }
 0x27f   : > { %vm1793_vm14 = vcmp.eq.f32.partialorder %v1792_v32, 8.507059e+37  ;;  %vm1848_vm15 = vweird.f32 %v5080_v8  ;;  %v1883_v62 = vmul.f32 %v3149_v43, %v5223_v23  ;;  %3154 = vtanh.f32 %v1876_v51  ;;  %1892 = vst [vmem:[%s5153_s16 + $0x20] sm:$0xff] %v1876_v51  ;;  %v5595_v32 = vld [vmem:[#allocation7_spill] sm:$0xff] }
 0x280   : > { %v2423_v33 = vmul.f32 %v5585_v14, %v5584_v7  ;;  %vm1733_vm0 = vcmp.eq.f32.partialorder %v1732_v52, 8.507059e+37  ;;  %v1796_v19 = vsel %vm1793_vm14, %v5586_v2, %v1791_v46  ;;  %3156 = vtanh.f32 %v2574_v54  ;;  %2787 = vst [vmem:[%s5153_s16 + $0x28] sm:$0xff] %v2574_v54 }
 0x281   : > { %v1736_v39 = vsel %vm1733_vm0, %v1735_v13, %v1731_v25  ;;  %vm2426_vm2 = vweird.f32 %v5585_v14  ;;  %v3151_v17 = vpop.eup %3150  ;;  %1887 = vst [vmem:[%s5265_s19 + $0x10] sm:$0xff] %v1883_v62  ;;  %v2431_v59 = vand.u32 2147483648, %v5589_v26  ;;  %v2484_v45 = vadd.f32 %v4961_v47, %v5590_v37 }
 0x282   : > { %v2424_v20 = vadd.f32 %v5585_v14, %v2423_v33  ;;  %v2489_v44 = vand.u32 2147483647, %v5568_v15  ;;  %3158 = vtanh.f32 %v2325_v6  ;;  %v3153_v31 = vpop.eup %3152  ;;  %v1869_v40 = vmul.f32 %v1865_v9, %v1796_v19 }
 0x283   : > { %v1873_v4 = vmul.f32 %v3151_v17, %v1736_v39  ;;  %vm2425_vm3 = vweird.f32 %v5589_v26  ;;  %v2429_v30 = vand.u32 2147483647, %v5589_v26  ;;  %v2533_v15 = vsel %vm5371_vm9, %v5069_v5, %v5238_v63 }
 0x284   : > { %v2542_v36 = vsub.f32 1.0, %v5259_v61  ;;  %v2581_v24 = vmul.f32 %v3153_v31, %v5227_v18  ;;  %vm5385_vm4 = vmor %vm2425_vm3, %vm2426_vm2  ;;  %v2488_v42 = vsel %vm5358_vm6, %v4961_v47, %v2484_v45  ;;  %vm1849_vm5 = vweird.f32 %v5171_v27 }
 0x285   : > { %v1877_v35 = vadd.f32 %v1873_v4, %v1869_v40  ;;  %v2428_v5 = vsel %vm5385_vm4, %v5585_v14, %v2424_v20  ;;  %vm2490_vm7 = vcmp.eq.f32.partialorder %v2489_v44, 8.507059e+37  ;;  %v3155_v18 = vpop.eup %3154  ;;  %v1841_v63 = vsel %vm5319_vm11, %v5205_v53, %v1836_v29  ;;  %vm1850_vm8 = vmor %vm1848_vm15, %vm1849_vm5 }
 0x286   : > { %v1847_v47 = vadd.f32 %v5171_v27, %v1846_v34  ;;  %2782 = vst [vmem:[%s5265_s19 + $0x18] sm:$0xff] %v2581_v24  ;;  %v2432_v61 = vor.u32 1.1754944e-38, %v2431_v59  ;;  %v2493_v16 = vsel %vm2490_vm7, %v5595_v32, %v2488_v42  ;;  %v3157_v11 = vpop.eup %3156  ;;  %v2538_v3 = vsel %vm5335_vm13, %v5215_v50, %v2533_v15 }
 0x287   : > { %v1884_v21 = vmul.f32 %v3155_v18, %v1841_v63  ;;  %3160 = vtanh.f32 %v1877_v35  ;;  %1893 = vst [vmem:[%s5153_s16 + $0x30] sm:$0xff] %v1877_v35  ;;  %vm2430_vm1 = vcmp.eq.f32.partialorder %v2429_v30, 8.507059e+37  ;;  %v1852_v48 = vand.u32 2147483647, %v5080_v8 }
 0x288   : > { %v3159_v28 = vpop.eup %3158  ;;  %v2543_v53 = vmul.f32 %v5212_v58, %v2542_v36  ;;  %v2582_v29 = vmul.f32 %v3157_v11, %v2538_v3  ;;  %v2433_v10 = vsel %vm2430_vm1, %v2432_v61, %v2428_v5  ;;  %v2567_v52 = vmul.f32 %v2780_v41, %v2493_v16 }
 0x289   : > { %1888 = vst [vmem:[%s5265_s19 + $0x20] sm:$0xff] %v1884_v21  ;;  %v2571_v50 = vmul.f32 %v3159_v28, %v2433_v10  ;;  %v1851_v38 = vsel %vm1850_vm8, %v5171_v27, %v1847_v47  ;;  %v1855_v60 = vor.u32 1.1754944e-38, %v1854_v12  ;;  %vm1853_vm10 = vcmp.eq.f32.partialorder %v1852_v48, 8.507059e+37 }
 0x28a   : > { %2783 = vst [vmem:[%s5265_s19 + $0x28] sm:$0xff] %v2582_v29  ;;  %v2544_v56 = vadd.f32 %v5212_v58, %v2543_v53  ;;  %vm2546_vm11 = vweird.f32 %v5212_v58  ;;  %v2551_v51 = vand.u32 2147483648, %v5117_v22  ;;  %vm2545_vm12 = vweird.f32 %v5117_v22 }
 0x28b   : > { %v2575_v57 = vadd.f32 %v2571_v50, %v2567_v52  ;;  %v1856_v49 = vsel %vm1853_vm10, %v1855_v60, %v1851_v38  ;;  %v2549_v27 = vand.u32 2147483647, %v5117_v22  ;;  %vm2547_vm13 = vmor %vm2545_vm12, %vm2546_vm11 }
 0x28c   : > { %v2548_v12 = vsel %vm2547_vm13, %v5212_v58, %v2544_v56  ;;  %v2552_v25 = vor.u32 1.1754944e-38, %v2551_v51 }
 0x28d   : > { %v3161_v46 = vpop.eup %3160  ;;  %3162 = vtanh.f32 %v2575_v57  ;;  %2788 = vst [vmem:[%s5153_s16 + $0x38] sm:$0xff] %v2575_v57  ;;  %vm2550_vm14 = vcmp.eq.f32.partialorder %v2549_v27, 8.507059e+37 }
 0x28e   : > { %v1885_v8 = vmul.f32 %v3161_v46, %v1856_v49  ;;  %v2553_v55 = vsel %vm2550_vm14, %v2552_v25, %v2548_v12 }
 0x290   : > { %1889 = vst [vmem:[%s5265_s19 + $0x30] sm:$0xff] %v1885_v8 }
 0x293   : > { %v3163_v6 = vpop.eup %3162 }
 0x294   : > { %v2583_v7 = vmul.f32 %v3163_v6, %v2553_v55 }
 0x296   : > { %2784 = vst [vmem:[%s5265_s19 + $0x38] sm:$0xff] %v2583_v7 }
 0x297 PF: > { %s17_s21 = sadd.s32 1, %s3170_s21  }
 0x298   : > { %p14_p4 = scmp.ge.s32.totalorder %s17_s21, 4  }
 0x29a   :  { %16 = sbr.rel (!%p14_p4) target bundleno = 1 (0x1), region = 92 }

</bundles_post_ra>
